<compile_context>
chip_gen: v6e
topology: v6e:2x2x1
jax: 0.10.0
libtpu: 0.0.40
codegen_flags: <defaults>
</compile_context>

<pallas_src>
import functools

import numpy as np
import jax
import jax.numpy as jnp
from jax.experimental import pallas as pl
from jax.experimental.pallas import tpu as pltpu


def _concurrence_kernel(b_ref, uc_ref, out_ref, *, dimA, dimB, num_term, eps):
    dAB = dimA * dimB
    b_blk = b_ref[...]                       # (num_term*2*dAB, num_term*2*rank)
    uc = uc_ref[...]                         # (num_term*2*rank, block_cand)

    # Single fused real matmul == num_term independent complex (U @ sqrt_rho^T).
    # Rows of v: per term t, [v_re (dAB rows) ; v_im (dAB rows)]; candidates on lanes.
    v = jnp.dot(b_blk, uc, preferred_element_type=jnp.float32,
                precision=jax.lax.Precision.HIGHEST)   # (num_term*2*dAB, C)

    loss = jnp.zeros((1, uc.shape[-1]), dtype=jnp.float32)
    for t in range(num_term):
        vt = v[t * 2 * dAB:(t + 1) * 2 * dAB, :]       # (2*dAB, C)

        def rows(a, imag, _vt=vt):
            off = (dAB if imag else 0) + a * dimB
            return _vt[off:off + dimB, :]              # (dimB, C)

        g_re = {}
        g_im = {}
        for a in range(dimA):
            va_re, va_im = rows(a, False), rows(a, True)
            for c in range(a, dimA):
                vc_re, vc_im = rows(c, False), rows(c, True)
                g_re[(a, c)] = jnp.sum(va_re * vc_re + va_im * vc_im,
                                       axis=0, keepdims=True)        # (1, C)
                if c != a:
                    g_im[(a, c)] = jnp.sum(va_im * vc_re - va_re * vc_im,
                                           axis=0, keepdims=True)

        if dimA == 2:
            # stable 2x2 PSD determinant form of 2*(prob^2 - purity)
            val = 4.0 * (g_re[(0, 0)] * g_re[(1, 1)]
                         - (g_re[(0, 1)] * g_re[(0, 1)]
                            + g_im[(0, 1)] * g_im[(0, 1)]))
        else:
            prob = sum(g_re[(a, a)] for a in range(dimA))
            purity = (sum(g_re[(a, a)] * g_re[(a, a)] for a in range(dimA))
                      + 2.0 * sum(g_re[(a, c)] * g_re[(a, c)]
                                  + g_im[(a, c)] * g_im[(a, c)]
                                  for a in range(dimA)
                                  for c in range(a + 1, dimA)))
            val = 2.0 * (prob * prob - purity)

        loss = loss + jnp.sqrt(jnp.maximum(jnp.float32(eps), val))

    out_ref[...] = loss                                 # lane-dense (1, block_cand)


def make_concurrence_loss_fn(sqrt_rho, dimA, dimB, num_term, block_cand=128):
    """sqrt_rho: complex (dimA, dimB, rank), fixed per density matrix.
    Returns a jitted fn: (num_cand, num_term, rank) complex Stiefel batch ->
    (num_cand,) float32 concurrence losses (one forward() per candidate)."""
    dAB = dimA * dimB
    rank = sqrt_rho.shape[-1]
    assert dimA <= dimB, "only the dimA <= dimB contraction branch is implemented"
    assert sqrt_rho.shape == (dimA, dimB, rank)

    # Hoisted per-rho constant: fused real block matrix for the complex matmul.
    s2 = np.asarray(sqrt_rho, dtype=np.complex128).reshape(dAB, rank)
    b_small = np.block([[s2.real, -s2.imag],
                        [s2.imag, s2.real]])                  # (2*dAB, 2*rank)
    b_blockdiag = jnp.asarray(
        np.kron(np.eye(num_term), b_small).astype(np.float32))  # (T*2*dAB, T*2*rank)

    eps = float(np.finfo(np.float32).tiny)
    kernel = functools.partial(_concurrence_kernel, dimA=dimA, dimB=dimB,
                               num_term=num_term, eps=eps)

    @jax.jit
    def loss_fn(mat_st_batch):
        num_cand = mat_st_batch.shape[0]
        assert mat_st_batch.shape == (num_cand, num_term, rank)
        u_re = jnp.real(mat_st_batch).astype(jnp.float32)
        u_im = jnp.imag(mat_st_batch).astype(jnp.float32)
        uc = jnp.concatenate([u_re, u_im], axis=-1)           # (C, T, 2R)
        uc = jnp.transpose(uc, (1, 2, 0))                     # (T, 2R, C)
        uc = uc.reshape(num_term * 2 * rank, num_cand)        # candidates -> lanes
        pad = (-num_cand) % block_cand
        if pad:
            uc = jnp.pad(uc, ((0, 0), (0, pad)))
        num_cand_p = num_cand + pad
        grid = (num_cand_p // block_cand,)

        out = pl.pallas_call(
            kernel,
            out_shape=jax.ShapeDtypeStruct((1, num_cand_p), jnp.float32),
            grid=grid,
            in_specs=[
                pl.BlockSpec((num_term * 2 * dAB, num_term * 2 * rank),
                             lambda i: (0, 0)),               # constant block, stays resident
                pl.BlockSpec((num_term * 2 * rank, block_cand),
                             lambda i: (0, i)),
            ],
            out_specs=pl.BlockSpec((1, block_cand), lambda i: (0, i)),
            compiler_params=pltpu.CompilerParams(
                dimension_semantics=("parallel",)),
        )(b_blockdiag, uc)
        return out[0, :num_cand]

    return loss_fn


if __name__ == "__main__":
    # 2-qubit concurrence: dimA = dimB = 2, rank = 4, num_term = 8, batch of 256 candidates
    dimA, dimB = 2, 2
    d = dimA * dimB
    rank = d
    num_term = 8
    num_cand = 256

    key = jax.random.PRNGKey(0)
    k1, k2, k3, k4 = jax.random.split(key, 4)

    # --- set_density_matrix glue (host-side, once): Hermitian PSD trace-1 rho ---
    a_re = np.asarray(jax.random.normal(k1, (d, d), dtype=jnp.float32), dtype=np.float64)
    a_im = np.asarray(jax.random.normal(k2, (d, d), dtype=jnp.float32), dtype=np.float64)
    A = a_re + 1j * a_im
    rho = A @ A.conj().T
    rho = rho / np.trace(rho).real
    EVL, EVC = np.linalg.eigh(rho)
    EVL = np.maximum(0.0, EVL[-rank:])
    EVC = EVC[:, -rank:]
    sqrt_rho = (EVC * np.sqrt(EVL)).reshape(dimA, dimB, rank)

    # --- batch of Stiefel points (polar retraction), host-side ---
    # TODO(synk): the Stiefel polar retraction (SVD) of the manifold parametrization
    # is done host-side in numpy; only forward() is implemented as a Pallas kernel.
    th_re = np.asarray(jax.random.normal(k3, (num_cand, num_term, rank),
                                         dtype=jnp.float32), dtype=np.float64)
    th_im = np.asarray(jax.random.normal(k4, (num_cand, num_term, rank),
                                         dtype=jnp.float32), dtype=np.float64)
    theta = th_re + 1j * th_im
    u_svd, _, vh_svd = np.linalg.svd(theta, full_matrices=False)
    mat_st = np.matmul(u_svd, vh_svd)                         # (C, T, R), U^H U = I

    # --- run the Pallas kernel (batched forward) ---
    loss_fn = make_concurrence_loss_fn(sqrt_rho, dimA, dimB, num_term)
    loss = loss_fn(jnp.asarray(mat_st, dtype=jnp.complex64))
    loss = np.asarray(jax.block_until_ready(loss))            # (num_cand,)

    # --- float64 numpy reference (original forward semantics, per candidate) ---
    V = np.einsum('ctr,abr->ctab', mat_st, sqrt_rho)          # (C, T, dimA, dimB)
    rdm = np.einsum('ctab,ctdb->ctad', V, V.conj())
    prob = np.einsum('ctaa->ct', rdm).real
    purity = np.einsum('ctad,ctad->ct', rdm, rdm.conj()).real
    ref = np.sqrt(np.maximum(np.finfo(np.float64).tiny,
                             2.0 * (prob * prob - purity))).sum(axis=1)

    assert loss.shape == (num_cand,)
    assert np.allclose(loss, ref, rtol=2e-3, atol=1e-4), float(np.abs(loss - ref).max())
    print("KERNEL_OK")
</pallas_src>

<mosaic_0001>
module attributes {stable_mosaic.version = 11 : i64} {
  func.func @_concurrence_kernel(%arg0: i32, %arg1: memref<64x64xf32, #tpu.memory_space<vmem>>, %arg2: memref<64x128xf32, #tpu.memory_space<vmem>>, %arg3: memref<1x128xf32, #tpu.memory_space<vmem>>) attributes {dimension_semantics = [#tpu.dimension_semantics<parallel>], iteration_bounds = array<i64: 2>, scalar_prefetch = 0 : i64, scratch_operands = 0 : i64, tpu.core_type = #tpu.core_type<tc>, window_params = [{pipeline_mode = #tpu.pipeline_mode<synchronous>, transform_indices = @transform_0, window_bounds = array<i64: 64, 64>}, {transform_indices = @transform_1, window_bounds = array<i64: 64, 128>}, {transform_indices = @transform_2, window_bounds = array<i64: 1, 128>}]} {
    %c0 = arith.constant 0 : index
    %c0_0 = arith.constant 0 : index
    %0 = vector.load %arg1[%c0, %c0_0] : memref<64x64xf32, #tpu.memory_space<vmem>>, vector<64x64xf32>
    %c0_1 = arith.constant 0 : index
    %c0_2 = arith.constant 0 : index
    %1 = vector.load %arg2[%c0_1, %c0_2] : memref<64x128xf32, #tpu.memory_space<vmem>>, vector<64x128xf32>
    %cst = arith.constant dense<0.000000e+00> : vector<64x128xf32>
    %2 = tpu.matmul %0, %1, %cst {dimension_numbers = #tpu.dot_dimension_numbers<[1], [0], [0], [1], [0, 0, 1, 1], [], []>, precision = #tpu.contract_precision<fp32>} : vector<64x64xf32>, vector<64x128xf32>, vector<64x128xf32> -> vector<64x128xf32>
    %cst_3 = arith.constant 0.000000e+00 : f32
    %3 = vector.broadcast %cst_3 : f32 to vector<1x128xf32>
    %4 = vector.extract_strided_slice %2 {offsets = [0, 0], sizes = [8, 128], strides = [1, 1]} : vector<64x128xf32> to vector<8x128xf32>
    %5 = vector.extract_strided_slice %4 {offsets = [0, 0], sizes = [2, 128], strides = [1, 1]} : vector<8x128xf32> to vector<2x128xf32>
    %6 = vector.extract_strided_slice %4 {offsets = [4, 0], sizes = [2, 128], strides = [1, 1]} : vector<8x128xf32> to vector<2x128xf32>
    %7 = vector.extract_strided_slice %4 {offsets = [0, 0], sizes = [2, 128], strides = [1, 1]} : vector<8x128xf32> to vector<2x128xf32>
    %8 = vector.extract_strided_slice %4 {offsets = [4, 0], sizes = [2, 128], strides = [1, 1]} : vector<8x128xf32> to vector<2x128xf32>
    %9 = arith.mulf %5, %7 : vector<2x128xf32>
    %10 = arith.mulf %6, %8 : vector<2x128xf32>
    %11 = arith.addf %9, %10 : vector<2x128xf32>
    %cst_4 = arith.constant dense<0.000000e+00> : vector<128xf32>
    %12 = vector.multi_reduction <add>, %11, %cst_4 [0] : vector<2x128xf32> to vector<128xf32>
    %13 = vector.shape_cast %12 : vector<128xf32> to vector<1x128xf32>
    %14 = vector.extract_strided_slice %4 {offsets = [2, 0], sizes = [2, 128], strides = [1, 1]} : vector<8x128xf32> to vector<2x128xf32>
    %15 = vector.extract_strided_slice %4 {offsets = [6, 0], sizes = [2, 128], strides = [1, 1]} : vector<8x128xf32> to vector<2x128xf32>
    %16 = arith.mulf %5, %14 : vector<2x128xf32>
    %17 = arith.mulf %6, %15 : vector<2x128xf32>
    %18 = arith.addf %16, %17 : vector<2x128xf32>
    %cst_5 = arith.constant dense<0.000000e+00> : vector<128xf32>
    %19 = vector.multi_reduction <add>, %18, %cst_5 [0] : vector<2x128xf32> to vector<128xf32>
    %20 = vector.shape_cast %19 : vector<128xf32> to vector<1x128xf32>
    %21 = arith.mulf %6, %14 : vector<2x128xf32>
    %22 = arith.mulf %5, %15 : vector<2x128xf32>
    %23 = arith.subf %21, %22 : vector<2x128xf32>
    %cst_6 = arith.constant dense<0.000000e+00> : vector<128xf32>
    %24 = vector.multi_reduction <add>, %23, %cst_6 [0] : vector<2x128xf32> to vector<128xf32>
    %25 = vector.shape_cast %24 : vector<128xf32> to vector<1x128xf32>
    %26 = vector.extract_strided_slice %4 {offsets = [2, 0], sizes = [2, 128], strides = [1, 1]} : vector<8x128xf32> to vector<2x128xf32>
    %27 = vector.extract_strided_slice %4 {offsets = [6, 0], sizes = [2, 128], strides = [1, 1]} : vector<8x128xf32> to vector<2x128xf32>
    %28 = vector.extract_strided_slice %4 {offsets = [2, 0], sizes = [2, 128], strides = [1, 1]} : vector<8x128xf32> to vector<2x128xf32>
    %29 = vector.extract_strided_slice %4 {offsets = [6, 0], sizes = [2, 128], strides = [1, 1]} : vector<8x128xf32> to vector<2x128xf32>
    %30 = arith.mulf %26, %28 : vector<2x128xf32>
    %31 = arith.mulf %27, %29 : vector<2x128xf32>
    %32 = arith.addf %30, %31 : vector<2x128xf32>
    %cst_7 = arith.constant dense<0.000000e+00> : vector<128xf32>
    %33 = vector.multi_reduction <add>, %32, %cst_7 [0] : vector<2x128xf32> to vector<128xf32>
    %34 = vector.shape_cast %33 : vector<128xf32> to vector<1x128xf32>
    %35 = arith.mulf %13, %34 : vector<1x128xf32>
    %36 = arith.mulf %20, %20 : vector<1x128xf32>
    %37 = arith.mulf %25, %25 : vector<1x128xf32>
    %38 = arith.addf %36, %37 : vector<1x128xf32>
    %39 = arith.subf %35, %38 : vector<1x128xf32>
    %cst_8 = arith.constant 4.000000e+00 : f32
    %40 = vector.broadcast %cst_8 : f32 to vector<1x128xf32>
    %41 = arith.mulf %40, %39 : vector<1x128xf32>
    %cst_9 = arith.constant 1.17549435E-38 : f32
    %42 = vector.broadcast %cst_9 : f32 to vector<1x128xf32>
    %43 = arith.maximumf %42, %41 : vector<1x128xf32>
    %44 = math.sqrt %43 : vector<1x128xf32>
    %45 = arith.addf %3, %44 : vector<1x128xf32>
    %46 = vector.extract_strided_slice %2 {offsets = [8, 0], sizes = [8, 128], strides = [1, 1]} : vector<64x128xf32> to vector<8x128xf32>
    %47 = vector.extract_strided_slice %46 {offsets = [0, 0], sizes = [2, 128], strides = [1, 1]} : vector<8x128xf32> to vector<2x128xf32>
    %48 = vector.extract_strided_slice %46 {offsets = [4, 0], sizes = [2, 128], strides = [1, 1]} : vector<8x128xf32> to vector<2x128xf32>
    %49 = vector.extract_strided_slice %46 {offsets = [0, 0], sizes = [2, 128], strides = [1, 1]} : vector<8x128xf32> to vector<2x128xf32>
    %50 = vector.extract_strided_slice %46 {offsets = [4, 0], sizes = [2, 128], strides = [1, 1]} : vector<8x128xf32> to vector<2x128xf32>
    %51 = arith.mulf %47, %49 : vector<2x128xf32>
    %52 = arith.mulf %48, %50 : vector<2x128xf32>
    %53 = arith.addf %51, %52 : vector<2x128xf32>
    %cst_10 = arith.constant dense<0.000000e+00> : vector<128xf32>
    %54 = vector.multi_reduction <add>, %53, %cst_10 [0] : vector<2x128xf32> to vector<128xf32>
    %55 = vector.shape_cast %54 : vector<128xf32> to vector<1x128xf32>
    %56 = vector.extract_strided_slice %46 {offsets = [2, 0], sizes = [2, 128], strides = [1, 1]} : vector<8x128xf32> to vector<2x128xf32>
    %57 = vector.extract_strided_slice %46 {offsets = [6, 0], sizes = [2, 128], strides = [1, 1]} : vector<8x128xf32> to vector<2x128xf32>
    %58 = arith.mulf %47, %56 : vector<2x128xf32>
    %59 = arith.mulf %48, %57 : vector<2x128xf32>
    %60 = arith.addf %58, %59 : vector<2x128xf32>
    %cst_11 = arith.constant dense<0.000000e+00> : vector<128xf32>
    %61 = vector.multi_reduction <add>, %60, %cst_11 [0] : vector<2x128xf32> to vector<128xf32>
    %62 = vector.shape_cast %61 : vector<128xf32> to vector<1x128xf32>
    %63 = arith.mulf %48, %56 : vector<2x128xf32>
    %64 = arith.mulf %47, %57 : vector<2x128xf32>
    %65 = arith.subf %63, %64 : vector<2x128xf32>
    %cst_12 = arith.constant dense<0.000000e+00> : vector<128xf32>
    %66 = vector.multi_reduction <add>, %65, %cst_12 [0] : vector<2x128xf32> to vector<128xf32>
    %67 = vector.shape_cast %66 : vector<128xf32> to vector<1x128xf32>
    %68 = vector.extract_strided_slice %46 {offsets = [2, 0], sizes = [2, 128], strides = [1, 1]} : vector<8x128xf32> to vector<2x128xf32>
    %69 = vector.extract_strided_slice %46 {offsets = [6, 0], sizes = [2, 128], strides = [1, 1]} : vector<8x128xf32> to vector<2x128xf32>
    %70 = vector.extract_strided_slice %46 {offsets = [2, 0], sizes = [2, 128], strides = [1, 1]} : vector<8x128xf32> to vector<2x128xf32>
    %71 = vector.extract_strided_slice %46 {offsets = [6, 0], sizes = [2, 128], strides = [1, 1]} : vector<8x128xf32> to vector<2x128xf32>
    %72 = arith.mulf %68, %70 : vector<2x128xf32>
    %73 = arith.mulf %69, %71 : vector<2x128xf32>
    %74 = arith.addf %72, %73 : vector<2x128xf32>
    %cst_13 = arith.constant dense<0.000000e+00> : vector<128xf32>
    %75 = vector.multi_reduction <add>, %74, %cst_13 [0] : vector<2x128xf32> to vector<128xf32>
    %76 = vector.shape_cast %75 : vector<128xf32> to vector<1x128xf32>
    %77 = arith.mulf %55, %76 : vector<1x128xf32>
    %78 = arith.mulf %62, %62 : vector<1x128xf32>
    %79 = arith.mulf %67, %67 : vector<1x128xf32>
    %80 = arith.addf %78, %79 : vector<1x128xf32>
    %81 = arith.subf %77, %80 : vector<1x128xf32>
    %cst_14 = arith.constant 4.000000e+00 : f32
    %82 = vector.broadcast %cst_14 : f32 to vector<1x128xf32>
    %83 = arith.mulf %82, %81 : vector<1x128xf32>
    %cst_15 = arith.constant 1.17549435E-38 : f32
    %84 = vector.broadcast %cst_15 : f32 to vector<1x128xf32>
    %85 = arith.maximumf %84, %83 : vector<1x128xf32>
    %86 = math.sqrt %85 : vector<1x128xf32>
    %87 = arith.addf %45, %86 : vector<1x128xf32>
    %88 = vector.extract_strided_slice %2 {offsets = [16, 0], sizes = [8, 128], strides = [1, 1]} : vector<64x128xf32> to vector<8x128xf32>
    %89 = vector.extract_strided_slice %88 {offsets = [0, 0], sizes = [2, 128], strides = [1, 1]} : vector<8x128xf32> to vector<2x128xf32>
    %90 = vector.extract_strided_slice %88 {offsets = [4, 0], sizes = [2, 128], strides = [1, 1]} : vector<8x128xf32> to vector<2x128xf32>
    %91 = vector.extract_strided_slice %88 {offsets = [0, 0], sizes = [2, 128], strides = [1, 1]} : vector<8x128xf32> to vector<2x128xf32>
    %92 = vector.extract_strided_slice %88 {offsets = [4, 0], sizes = [2, 128], strides = [1, 1]} : vector<8x128xf32> to vector<2x128xf32>
    %93 = arith.mulf %89, %91 : vector<2x128xf32>
    %94 = arith.mulf %90, %92 : vector<2x128xf32>
    %95 = arith.addf %93, %94 : vector<2x128xf32>
    %cst_16 = arith.constant dense<0.000000e+00> : vector<128xf32>
    %96 = vector.multi_reduction <add>, %95, %cst_16 [0] : vector<2x128xf32> to vector<128xf32>
    %97 = vector.shape_cast %96 : vector<128xf32> to vector<1x128xf32>
    %98 = vector.extract_strided_slice %88 {offsets = [2, 0], sizes = [2, 128], strides = [1, 1]} : vector<8x128xf32> to vector<2x128xf32>
    %99 = vector.extract_strided_slice %88 {offsets = [6, 0], sizes = [2, 128], strides = [1, 1]} : vector<8x128xf32> to vector<2x128xf32>
    %100 = arith.mulf %89, %98 : vector<2x128xf32>
    %101 = arith.mulf %90, %99 : vector<2x128xf32>
    %102 = arith.addf %100, %101 : vector<2x128xf32>
    %cst_17 = arith.constant dense<0.000000e+00> : vector<128xf32>
    %103 = vector.multi_reduction <add>, %102, %cst_17 [0] : vector<2x128xf32> to vector<128xf32>
    %104 = vector.shape_cast %103 : vector<128xf32> to vector<1x128xf32>
    %105 = arith.mulf %90, %98 : vector<2x128xf32>
    %106 = arith.mulf %89, %99 : vector<2x128xf32>
    %107 = arith.subf %105, %106 : vector<2x128xf32>
    %cst_18 = arith.constant dense<0.000000e+00> : vector<128xf32>
    %108 = vector.multi_reduction <add>, %107, %cst_18 [0] : vector<2x128xf32> to vector<128xf32>
    %109 = vector.shape_cast %108 : vector<128xf32> to vector<1x128xf32>
    %110 = vector.extract_strided_slice %88 {offsets = [2, 0], sizes = [2, 128], strides = [1, 1]} : vector<8x128xf32> to vector<2x128xf32>
    %111 = vector.extract_strided_slice %88 {offsets = [6, 0], sizes = [2, 128], strides = [1, 1]} : vector<8x128xf32> to vector<2x128xf32>
    %112 = vector.extract_strided_slice %88 {offsets = [2, 0], sizes = [2, 128], strides = [1, 1]} : vector<8x128xf32> to vector<2x128xf32>
    %113 = vector.extract_strided_slice %88 {offsets = [6, 0], sizes = [2, 128], strides = [1, 1]} : vector<8x128xf32> to vector<2x128xf32>
    %114 = arith.mulf %110, %112 : vector<2x128xf32>
    %115 = arith.mulf %111, %113 : vector<2x128xf32>
    %116 = arith.addf %114, %115 : vector<2x128xf32>
    %cst_19 = arith.constant dense<0.000000e+00> : vector<128xf32>
    %117 = vector.multi_reduction <add>, %116, %cst_19 [0] : vector<2x128xf32> to vector<128xf32>
    %118 = vector.shape_cast %117 : vector<128xf32> to vector<1x128xf32>
    %119 = arith.mulf %97, %118 : vector<1x128xf32>
    %120 = arith.mulf %104, %104 : vector<1x128xf32>
    %121 = arith.mulf %109, %109 : vector<1x128xf32>
    %122 = arith.addf %120, %121 : vector<1x128xf32>
    %123 = arith.subf %119, %122 : vector<1x128xf32>
    %cst_20 = arith.constant 4.000000e+00 : f32
    %124 = vector.broadcast %cst_20 : f32 to vector<1x128xf32>
    %125 = arith.mulf %124, %123 : vector<1x128xf32>
    %cst_21 = arith.constant 1.17549435E-38 : f32
    %126 = vector.broadcast %cst_21 : f32 to vector<1x128xf32>
    %127 = arith.maximumf %126, %125 : vector<1x128xf32>
    %128 = math.sqrt %127 : vector<1x128xf32>
    %129 = arith.addf %87, %128 : vector<1x128xf32>
    %130 = vector.extract_strided_slice %2 {offsets = [24, 0], sizes = [8, 128], strides = [1, 1]} : vector<64x128xf32> to vector<8x128xf32>
    %131 = vector.extract_strided_slice %130 {offsets = [0, 0], sizes = [2, 128], strides = [1, 1]} : vector<8x128xf32> to vector<2x128xf32>
    %132 = vector.extract_strided_slice %130 {offsets = [4, 0], sizes = [2, 128], strides = [1, 1]} : vector<8x128xf32> to vector<2x128xf32>
    %133 = vector.extract_strided_slice %130 {offsets = [0, 0], sizes = [2, 128], strides = [1, 1]} : vector<8x128xf32> to vector<2x128xf32>
    %134 = vector.extract_strided_slice %130 {offsets = [4, 0], sizes = [2, 128], strides = [1, 1]} : vector<8x128xf32> to vector<2x128xf32>
    %135 = arith.mulf %131, %133 : vector<2x128xf32>
    %136 = arith.mulf %132, %134 : vector<2x128xf32>
    %137 = arith.addf %135, %136 : vector<2x128xf32>
    %cst_22 = arith.constant dense<0.000000e+00> : vector<128xf32>
    %138 = vector.multi_reduction <add>, %137, %cst_22 [0] : vector<2x128xf32> to vector<128xf32>
    %139 = vector.shape_cast %138 : vector<128xf32> to vector<1x128xf32>
    %140 = vector.extract_strided_slice %130 {offsets = [2, 0], sizes = [2, 128], strides = [1, 1]} : vector<8x128xf32> to vector<2x128xf32>
    %141 = vector.extract_strided_slice %130 {offsets = [6, 0], sizes = [2, 128], strides = [1, 1]} : vector<8x128xf32> to vector<2x128xf32>
    %142 = arith.mulf %131, %140 : vector<2x128xf32>
    %143 = arith.mulf %132, %141 : vector<2x128xf32>
    %144 = arith.addf %142, %143 : vector<2x128xf32>
    %cst_23 = arith.constant dense<0.000000e+00> : vector<128xf32>
    %145 = vector.multi_reduction <add>, %144, %cst_23 [0] : vector<2x128xf32> to vector<128xf32>
    %146 = vector.shape_cast %145 : vector<128xf32> to vector<1x128xf32>
    %147 = arith.mulf %132, %140 : vector<2x128xf32>
    %148 = arith.mulf %131, %141 : vector<2x128xf32>
    %149 = arith.subf %147, %148 : vector<2x128xf32>
    %cst_24 = arith.constant dense<0.000000e+00> : vector<128xf32>
    %150 = vector.multi_reduction <add>, %149, %cst_24 [0] : vector<2x128xf32> to vector<128xf32>
    %151 = vector.shape_cast %150 : vector<128xf32> to vector<1x128xf32>
    %152 = vector.extract_strided_slice %130 {offsets = [2, 0], sizes = [2, 128], strides = [1, 1]} : vector<8x128xf32> to vector<2x128xf32>
    %153 = vector.extract_strided_slice %130 {offsets = [6, 0], sizes = [2, 128], strides = [1, 1]} : vector<8x128xf32> to vector<2x128xf32>
    %154 = vector.extract_strided_slice %130 {offsets = [2, 0], sizes = [2, 128], strides = [1, 1]} : vector<8x128xf32> to vector<2x128xf32>
    %155 = vector.extract_strided_slice %130 {offsets = [6, 0], sizes = [2, 128], strides = [1, 1]} : vector<8x128xf32> to vector<2x128xf32>
    %156 = arith.mulf %152, %154 : vector<2x128xf32>
    %157 = arith.mulf %153, %155 : vector<2x128xf32>
    %158 = arith.addf %156, %157 : vector<2x128xf32>
    %cst_25 = arith.constant dense<0.000000e+00> : vector<128xf32>
    %159 = vector.multi_reduction <add>, %158, %cst_25 [0] : vector<2x128xf32> to vector<128xf32>
    %160 = vector.shape_cast %159 : vector<128xf32> to vector<1x128xf32>
    %161 = arith.mulf %139, %160 : vector<1x128xf32>
    %162 = arith.mulf %146, %146 : vector<1x128xf32>
    %163 = arith.mulf %151, %151 : vector<1x128xf32>
    %164 = arith.addf %162, %163 : vector<1x128xf32>
    %165 = arith.subf %161, %164 : vector<1x128xf32>
    %cst_26 = arith.constant 4.000000e+00 : f32
    %166 = vector.broadcast %cst_26 : f32 to vector<1x128xf32>
    %167 = arith.mulf %166, %165 : vector<1x128xf32>
    %cst_27 = arith.constant 1.17549435E-38 : f32
    %168 = vector.broadcast %cst_27 : f32 to vector<1x128xf32>
    %169 = arith.maximumf %168, %167 : vector<1x128xf32>
    %170 = math.sqrt %169 : vector<1x128xf32>
    %171 = arith.addf %129, %170 : vector<1x128xf32>
    %172 = vector.extract_strided_slice %2 {offsets = [32, 0], sizes = [8, 128], strides = [1, 1]} : vector<64x128xf32> to vector<8x128xf32>
    %173 = vector.extract_strided_slice %172 {offsets = [0, 0], sizes = [2, 128], strides = [1, 1]} : vector<8x128xf32> to vector<2x128xf32>
    %174 = vector.extract_strided_slice %172 {offsets = [4, 0], sizes = [2, 128], strides = [1, 1]} : vector<8x128xf32> to vector<2x128xf32>
    %175 = vector.extract_strided_slice %172 {offsets = [0, 0], sizes = [2, 128], strides = [1, 1]} : vector<8x128xf32> to vector<2x128xf32>
    %176 = vector.extract_strided_slice %172 {offsets = [4, 0], sizes = [2, 128], strides = [1, 1]} : vector<8x128xf32> to vector<2x128xf32>
    %177 = arith.mulf %173, %175 : vector<2x128xf32>
    %178 = arith.mulf %174, %176 : vector<2x128xf32>
    %179 = arith.addf %177, %178 : vector<2x128xf32>
    %cst_28 = arith.constant dense<0.000000e+00> : vector<128xf32>
    %180 = vector.multi_reduction <add>, %179, %cst_28 [0] : vector<2x128xf32> to vector<128xf32>
    %181 = vector.shape_cast %180 : vector<128xf32> to vector<1x128xf32>
    %182 = vector.extract_strided_slice %172 {offsets = [2, 0], sizes = [2, 128], strides = [1, 1]} : vector<8x128xf32> to vector<2x128xf32>
    %183 = vector.extract_strided_slice %172 {offsets = [6, 0], sizes = [2, 128], strides = [1, 1]} : vector<8x128xf32> to vector<2x128xf32>
    %184 = arith.mulf %173, %182 : vector<2x128xf32>
    %185 = arith.mulf %174, %183 : vector<2x128xf32>
    %186 = arith.addf %184, %185 : vector<2x128xf32>
    %cst_29 = arith.constant dense<0.000000e+00> : vector<128xf32>
    %187 = vector.multi_reduction <add>, %186, %cst_29 [0] : vector<2x128xf32> to vector<128xf32>
    %188 = vector.shape_cast %187 : vector<128xf32> to vector<1x128xf32>
    %189 = arith.mulf %174, %182 : vector<2x128xf32>
    %190 = arith.mulf %173, %183 : vector<2x128xf32>
    %191 = arith.subf %189, %190 : vector<2x128xf32>
    %cst_30 = arith.constant dense<0.000000e+00> : vector<128xf32>
    %192 = vector.multi_reduction <add>, %191, %cst_30 [0] : vector<2x128xf32> to vector<128xf32>
    %193 = vector.shape_cast %192 : vector<128xf32> to vector<1x128xf32>
    %194 = vector.extract_strided_slice %172 {offsets = [2, 0], sizes = [2, 128], strides = [1, 1]} : vector<8x128xf32> to vector<2x128xf32>
    %195 = vector.extract_strided_slice %172 {offsets = [6, 0], sizes = [2, 128], strides = [1, 1]} : vector<8x128xf32> to vector<2x128xf32>
    %196 = vector.extract_strided_slice %172 {offsets = [2, 0], sizes = [2, 128], strides = [1, 1]} : vector<8x128xf32> to vector<2x128xf32>
    %197 = vector.extract_strided_slice %172 {offsets = [6, 0], sizes = [2, 128], strides = [1, 1]} : vector<8x128xf32> to vector<2x128xf32>
    %198 = arith.mulf %194, %196 : vector<2x128xf32>
    %199 = arith.mulf %195, %197 : vector<2x128xf32>
    %200 = arith.addf %198, %199 : vector<2x128xf32>
    %cst_31 = arith.constant dense<0.000000e+00> : vector<128xf32>
    %201 = vector.multi_reduction <add>, %200, %cst_31 [0] : vector<2x128xf32> to vector<128xf32>
    %202 = vector.shape_cast %201 : vector<128xf32> to vector<1x128xf32>
    %203 = arith.mulf %181, %202 : vector<1x128xf32>
    %204 = arith.mulf %188, %188 : vector<1x128xf32>
    %205 = arith.mulf %193, %193 : vector<1x128xf32>
    %206 = arith.addf %204, %205 : vector<1x128xf32>
    %207 = arith.subf %203, %206 : vector<1x128xf32>
    %cst_32 = arith.constant 4.000000e+00 : f32
    %208 = vector.broadcast %cst_32 : f32 to vector<1x128xf32>
    %209 = arith.mulf %208, %207 : vector<1x128xf32>
    %cst_33 = arith.constant 1.17549435E-38 : f32
    %210 = vector.broadcast %cst_33 : f32 to vector<1x128xf32>
    %211 = arith.maximumf %210, %209 : vector<1x128xf32>
    %212 = math.sqrt %211 : vector<1x128xf32>
    %213 = arith.addf %171, %212 : vector<1x128xf32>
    %214 = vector.extract_strided_slice %2 {offsets = [40, 0], sizes = [8, 128], strides = [1, 1]} : vector<64x128xf32> to vector<8x128xf32>
    %215 = vector.extract_strided_slice %214 {offsets = [0, 0], sizes = [2, 128], strides = [1, 1]} : vector<8x128xf32> to vector<2x128xf32>
    %216 = vector.extract_strided_slice %214 {offsets = [4, 0], sizes = [2, 128], strides = [1, 1]} : vector<8x128xf32> to vector<2x128xf32>
    %217 = vector.extract_strided_slice %214 {offsets = [0, 0], sizes = [2, 128], strides = [1, 1]} : vector<8x128xf32> to vector<2x128xf32>
    %218 = vector.extract_strided_slice %214 {offsets = [4, 0], sizes = [2, 128], strides = [1, 1]} : vector<8x128xf32> to vector<2x128xf32>
    %219 = arith.mulf %215, %217 : vector<2x128xf32>
    %220 = arith.mulf %216, %218 : vector<2x128xf32>
    %221 = arith.addf %219, %220 : vector<2x128xf32>
    %cst_34 = arith.constant dense<0.000000e+00> : vector<128xf32>
    %222 = vector.multi_reduction <add>, %221, %cst_34 [0] : vector<2x128xf32> to vector<128xf32>
    %223 = vector.shape_cast %222 : vector<128xf32> to vector<1x128xf32>
    %224 = vector.extract_strided_slice %214 {offsets = [2, 0], sizes = [2, 128], strides = [1, 1]} : vector<8x128xf32> to vector<2x128xf32>
    %225 = vector.extract_strided_slice %214 {offsets = [6, 0], sizes = [2, 128], strides = [1, 1]} : vector<8x128xf32> to vector<2x128xf32>
    %226 = arith.mulf %215, %224 : vector<2x128xf32>
    %227 = arith.mulf %216, %225 : vector<2x128xf32>
    %228 = arith.addf %226, %227 : vector<2x128xf32>
    %cst_35 = arith.constant dense<0.000000e+00> : vector<128xf32>
    %229 = vector.multi_reduction <add>, %228, %cst_35 [0] : vector<2x128xf32> to vector<128xf32>
    %230 = vector.shape_cast %229 : vector<128xf32> to vector<1x128xf32>
    %231 = arith.mulf %216, %224 : vector<2x128xf32>
    %232 = arith.mulf %215, %225 : vector<2x128xf32>
    %233 = arith.subf %231, %232 : vector<2x128xf32>
    %cst_36 = arith.constant dense<0.000000e+00> : vector<128xf32>
    %234 = vector.multi_reduction <add>, %233, %cst_36 [0] : vector<2x128xf32> to vector<128xf32>
    %235 = vector.shape_cast %234 : vector<128xf32> to vector<1x128xf32>
    %236 = vector.extract_strided_slice %214 {offsets = [2, 0], sizes = [2, 128], strides = [1, 1]} : vector<8x128xf32> to vector<2x128xf32>
    %237 = vector.extract_strided_slice %214 {offsets = [6, 0], sizes = [2, 128], strides = [1, 1]} : vector<8x128xf32> to vector<2x128xf32>
    %238 = vector.extract_strided_slice %214 {offsets = [2, 0], sizes = [2, 128], strides = [1, 1]} : vector<8x128xf32> to vector<2x128xf32>
    %239 = vector.extract_strided_slice %214 {offsets = [6, 0], sizes = [2, 128], strides = [1, 1]} : vector<8x128xf32> to vector<2x128xf32>
    %240 = arith.mulf %236, %238 : vector<2x128xf32>
    %241 = arith.mulf %237, %239 : vector<2x128xf32>
    %242 = arith.addf %240, %241 : vector<2x128xf32>
    %cst_37 = arith.constant dense<0.000000e+00> : vector<128xf32>
    %243 = vector.multi_reduction <add>, %242, %cst_37 [0] : vector<2x128xf32> to vector<128xf32>
    %244 = vector.shape_cast %243 : vector<128xf32> to vector<1x128xf32>
    %245 = arith.mulf %223, %244 : vector<1x128xf32>
    %246 = arith.mulf %230, %230 : vector<1x128xf32>
    %247 = arith.mulf %235, %235 : vector<1x128xf32>
    %248 = arith.addf %246, %247 : vector<1x128xf32>
    %249 = arith.subf %245, %248 : vector<1x128xf32>
    %cst_38 = arith.constant 4.000000e+00 : f32
    %250 = vector.broadcast %cst_38 : f32 to vector<1x128xf32>
    %251 = arith.mulf %250, %249 : vector<1x128xf32>
    %cst_39 = arith.constant 1.17549435E-38 : f32
    %252 = vector.broadcast %cst_39 : f32 to vector<1x128xf32>
    %253 = arith.maximumf %252, %251 : vector<1x128xf32>
    %254 = math.sqrt %253 : vector<1x128xf32>
    %255 = arith.addf %213, %254 : vector<1x128xf32>
    %256 = vector.extract_strided_slice %2 {offsets = [48, 0], sizes = [8, 128], strides = [1, 1]} : vector<64x128xf32> to vector<8x128xf32>
    %257 = vector.extract_strided_slice %256 {offsets = [0, 0], sizes = [2, 128], strides = [1, 1]} : vector<8x128xf32> to vector<2x128xf32>
    %258 = vector.extract_strided_slice %256 {offsets = [4, 0], sizes = [2, 128], strides = [1, 1]} : vector<8x128xf32> to vector<2x128xf32>
    %259 = vector.extract_strided_slice %256 {offsets = [0, 0], sizes = [2, 128], strides = [1, 1]} : vector<8x128xf32> to vector<2x128xf32>
    %260 = vector.extract_strided_slice %256 {offsets = [4, 0], sizes = [2, 128], strides = [1, 1]} : vector<8x128xf32> to vector<2x128xf32>
    %261 = arith.mulf %257, %259 : vector<2x128xf32>
    %262 = arith.mulf %258, %260 : vector<2x128xf32>
    %263 = arith.addf %261, %262 : vector<2x128xf32>
    %cst_40 = arith.constant dense<0.000000e+00> : vector<128xf32>
    %264 = vector.multi_reduction <add>, %263, %cst_40 [0] : vector<2x128xf32> to vector<128xf32>
    %265 = vector.shape_cast %264 : vector<128xf32> to vector<1x128xf32>
    %266 = vector.extract_strided_slice %256 {offsets = [2, 0], sizes = [2, 128], strides = [1, 1]} : vector<8x128xf32> to vector<2x128xf32>
    %267 = vector.extract_strided_slice %256 {offsets = [6, 0], sizes = [2, 128], strides = [1, 1]} : vector<8x128xf32> to vector<2x128xf32>
    %268 = arith.mulf %257, %266 : vector<2x128xf32>
    %269 = arith.mulf %258, %267 : vector<2x128xf32>
    %270 = arith.addf %268, %269 : vector<2x128xf32>
    %cst_41 = arith.constant dense<0.000000e+00> : vector<128xf32>
    %271 = vector.multi_reduction <add>, %270, %cst_41 [0] : vector<2x128xf32> to vector<128xf32>
    %272 = vector.shape_cast %271 : vector<128xf32> to vector<1x128xf32>
    %273 = arith.mulf %258, %266 : vector<2x128xf32>
    %274 = arith.mulf %257, %267 : vector<2x128xf32>
    %275 = arith.subf %273, %274 : vector<2x128xf32>
    %cst_42 = arith.constant dense<0.000000e+00> : vector<128xf32>
    %276 = vector.multi_reduction <add>, %275, %cst_42 [0] : vector<2x128xf32> to vector<128xf32>
    %277 = vector.shape_cast %276 : vector<128xf32> to vector<1x128xf32>
    %278 = vector.extract_strided_slice %256 {offsets = [2, 0], sizes = [2, 128], strides = [1, 1]} : vector<8x128xf32> to vector<2x128xf32>
    %279 = vector.extract_strided_slice %256 {offsets = [6, 0], sizes = [2, 128], strides = [1, 1]} : vector<8x128xf32> to vector<2x128xf32>
    %280 = vector.extract_strided_slice %256 {offsets = [2, 0], sizes = [2, 128], strides = [1, 1]} : vector<8x128xf32> to vector<2x128xf32>
    %281 = vector.extract_strided_slice %256 {offsets = [6, 0], sizes = [2, 128], strides = [1, 1]} : vector<8x128xf32> to vector<2x128xf32>
    %282 = arith.mulf %278, %280 : vector<2x128xf32>
    %283 = arith.mulf %279, %281 : vector<2x128xf32>
    %284 = arith.addf %282, %283 : vector<2x128xf32>
    %cst_43 = arith.constant dense<0.000000e+00> : vector<128xf32>
    %285 = vector.multi_reduction <add>, %284, %cst_43 [0] : vector<2x128xf32> to vector<128xf32>
    %286 = vector.shape_cast %285 : vector<128xf32> to vector<1x128xf32>
    %287 = arith.mulf %265, %286 : vector<1x128xf32>
    %288 = arith.mulf %272, %272 : vector<1x128xf32>
    %289 = arith.mulf %277, %277 : vector<1x128xf32>
    %290 = arith.addf %288, %289 : vector<1x128xf32>
    %291 = arith.subf %287, %290 : vector<1x128xf32>
    %cst_44 = arith.constant 4.000000e+00 : f32
    %292 = vector.broadcast %cst_44 : f32 to vector<1x128xf32>
    %293 = arith.mulf %292, %291 : vector<1x128xf32>
    %cst_45 = arith.constant 1.17549435E-38 : f32
    %294 = vector.broadcast %cst_45 : f32 to vector<1x128xf32>
    %295 = arith.maximumf %294, %293 : vector<1x128xf32>
    %296 = math.sqrt %295 : vector<1x128xf32>
    %297 = arith.addf %255, %296 : vector<1x128xf32>
    %298 = vector.extract_strided_slice %2 {offsets = [56, 0], sizes = [8, 128], strides = [1, 1]} : vector<64x128xf32> to vector<8x128xf32>
    %299 = vector.extract_strided_slice %298 {offsets = [0, 0], sizes = [2, 128], strides = [1, 1]} : vector<8x128xf32> to vector<2x128xf32>
    %300 = vector.extract_strided_slice %298 {offsets = [4, 0], sizes = [2, 128], strides = [1, 1]} : vector<8x128xf32> to vector<2x128xf32>
    %301 = vector.extract_strided_slice %298 {offsets = [0, 0], sizes = [2, 128], strides = [1, 1]} : vector<8x128xf32> to vector<2x128xf32>
    %302 = vector.extract_strided_slice %298 {offsets = [4, 0], sizes = [2, 128], strides = [1, 1]} : vector<8x128xf32> to vector<2x128xf32>
    %303 = arith.mulf %299, %301 : vector<2x128xf32>
    %304 = arith.mulf %300, %302 : vector<2x128xf32>
    %305 = arith.addf %303, %304 : vector<2x128xf32>
    %cst_46 = arith.constant dense<0.000000e+00> : vector<128xf32>
    %306 = vector.multi_reduction <add>, %305, %cst_46 [0] : vector<2x128xf32> to vector<128xf32>
    %307 = vector.shape_cast %306 : vector<128xf32> to vector<1x128xf32>
    %308 = vector.extract_strided_slice %298 {offsets = [2, 0], sizes = [2, 128], strides = [1, 1]} : vector<8x128xf32> to vector<2x128xf32>
    %309 = vector.extract_strided_slice %298 {offsets = [6, 0], sizes = [2, 128], strides = [1, 1]} : vector<8x128xf32> to vector<2x128xf32>
    %310 = arith.mulf %299, %308 : vector<2x128xf32>
    %311 = arith.mulf %300, %309 : vector<2x128xf32>
    %312 = arith.addf %310, %311 : vector<2x128xf32>
    %cst_47 = arith.constant dense<0.000000e+00> : vector<128xf32>
    %313 = vector.multi_reduction <add>, %312, %cst_47 [0] : vector<2x128xf32> to vector<128xf32>
    %314 = vector.shape_cast %313 : vector<128xf32> to vector<1x128xf32>
    %315 = arith.mulf %300, %308 : vector<2x128xf32>
    %316 = arith.mulf %299, %309 : vector<2x128xf32>
    %317 = arith.subf %315, %316 : vector<2x128xf32>
    %cst_48 = arith.constant dense<0.000000e+00> : vector<128xf32>
    %318 = vector.multi_reduction <add>, %317, %cst_48 [0] : vector<2x128xf32> to vector<128xf32>
    %319 = vector.shape_cast %318 : vector<128xf32> to vector<1x128xf32>
    %320 = vector.extract_strided_slice %298 {offsets = [2, 0], sizes = [2, 128], strides = [1, 1]} : vector<8x128xf32> to vector<2x128xf32>
    %321 = vector.extract_strided_slice %298 {offsets = [6, 0], sizes = [2, 128], strides = [1, 1]} : vector<8x128xf32> to vector<2x128xf32>
    %322 = vector.extract_strided_slice %298 {offsets = [2, 0], sizes = [2, 128], strides = [1, 1]} : vector<8x128xf32> to vector<2x128xf32>
    %323 = vector.extract_strided_slice %298 {offsets = [6, 0], sizes = [2, 128], strides = [1, 1]} : vector<8x128xf32> to vector<2x128xf32>
    %324 = arith.mulf %320, %322 : vector<2x128xf32>
    %325 = arith.mulf %321, %323 : vector<2x128xf32>
    %326 = arith.addf %324, %325 : vector<2x128xf32>
    %cst_49 = arith.constant dense<0.000000e+00> : vector<128xf32>
    %327 = vector.multi_reduction <add>, %326, %cst_49 [0] : vector<2x128xf32> to vector<128xf32>
    %328 = vector.shape_cast %327 : vector<128xf32> to vector<1x128xf32>
    %329 = arith.mulf %307, %328 : vector<1x128xf32>
    %330 = arith.mulf %314, %314 : vector<1x128xf32>
    %331 = arith.mulf %319, %319 : vector<1x128xf32>
    %332 = arith.addf %330, %331 : vector<1x128xf32>
    %333 = arith.subf %329, %332 : vector<1x128xf32>
    %cst_50 = arith.constant 4.000000e+00 : f32
    %334 = vector.broadcast %cst_50 : f32 to vector<1x128xf32>
    %335 = arith.mulf %334, %333 : vector<1x128xf32>
    %cst_51 = arith.constant 1.17549435E-38 : f32
    %336 = vector.broadcast %cst_51 : f32 to vector<1x128xf32>
    %337 = arith.maximumf %336, %335 : vector<1x128xf32>
    %338 = math.sqrt %337 : vector<1x128xf32>
    %339 = arith.addf %297, %338 : vector<1x128xf32>
    %c0_52 = arith.constant 0 : index
    %c0_53 = arith.constant 0 : index
    %340 = vector.load %arg3[%c0_52, %c0_53] : memref<1x128xf32, #tpu.memory_space<vmem>>, vector<1x128xf32>
    tpu.vector_store %arg3[%c0_52, %c0_53], %339 {strides = array<i32>} : memref<1x128xf32, #tpu.memory_space<vmem>>, vector<1x128xf32>,
    return
  }
  func.func @transform_0(%arg0: i32) -> (i32, i32) {
    %c0_i32 = arith.constant 0 : i32
    %c0_i32_0 = arith.constant 0 : i32
    %c0_i32_1 = arith.constant 0 : i32
    return %c0_i32, %c0_i32_0 : i32, i32
  }
  func.func @transform_1(%arg0: i32) -> (i32, i32) {
    %c0_i32 = arith.constant 0 : i32
    %c0_i32_0 = arith.constant 0 : i32
    return %c0_i32, %arg0 : i32, i32
  }
  func.func @transform_2(%arg0: i32) -> (i32, i32) {
    %c0_i32 = arith.constant 0 : i32
    %c0_i32_0 = arith.constant 0 : i32
    return %c0_i32, %arg0 : i32, i32
  }
}

</mosaic_0001>

<bundles_post_ra>
// kernel: custom-call.1
= control target key start
LH: loop header
LB: loop body
LE: loop exit
PB: predicated region body
PF: predicated region fallthrough
CT: control target
= control target key end

     0   :  { %s51_s0 = inlined_call_operand.hbm [shape: c64[256,8,4], index: 0, kind: input, shape index: {}]   ;;  %s52_s1 = inlined_call_operand.vmem [shape: f32[256,8,4], index: 1, kind: output, shape index: {}]  }
   0x1   :  { %s2_s8 = scalar_lea.hbm %s51_s0, 1024 }
   0x2   :  { %3 = vsyncpa [#allocation0], 0  ;;  %s4_s11 = sshll.u32 %s52_s1, 4  ;;  %s5_s11 = int_to_ptr.vmem [resolvable:$true] %s4_s11 }
   0x3   :  { %s20_s12 = scalar_lea.vmem %s5_s11, 1024  ;;  %p25_p1 = scmp.lt.s32.totalorder %s5_s11, %s5_s11 }
   0x4   :  { %p21_p0 = scmp.ne.s32.totalorder %s5_s11, %s20_s12  ;;  %p26_p2 = scmp.lt.s32.totalorder %s20_s12, %s20_s12 }
   0x6   :  { %p27_p3 = por %p26_p2, %p25_p1 }
   0x8   :  { %p28_p4 = pnand %p27_p3, %p21_p0 }
   0xa   :  { %31 = shalt.err (!%p28_p4)  }
   0xb   :  { %7 = dma.hbm_to_vmem [thread:$0]  %s2_s8, 1024, %s5_s11, [#allocation0] }
   0xc   :  { %33 = dma.done.wait [#allocation0], 1024  }
   0xd   :  { %34 = vsyncadd [#allocation0], 4294966272 }
   0xe   :  { %9 = vsyncpa [#allocation0], 1 }

// kernel: custom-call
= control target key start
LH: loop header
LB: loop body
LE: loop exit
PB: predicated region body
PF: predicated region fallthrough
CT: control target
= control target key end

     0   :  { %2 = vsyncpa [#allocation0], 0  ;;  %s47_s0 = inlined_call_operand.hbm [shape: c64[256,8,4], index: 0, kind: input, shape index: {}]   ;;  %s48_s1 = inlined_call_operand.vmem [shape: f32[256,8,4], index: 1, kind: output, shape index: {}]  }
   0x1   :  { %s3_s8 = sshll.u32 %s48_s1, 4  ;;  %s4_s8 = int_to_ptr.vmem [resolvable:$true] %s3_s8 }
   0x2   :  { %s17_s9 = scalar_lea.vmem %s4_s8, 1024  ;;  %p22_p1 = scmp.lt.s32.totalorder %s4_s8, %s4_s8 }
   0x3   :  { %p18_p0 = scmp.ne.s32.totalorder %s4_s8, %s17_s9  ;;  %p23_p2 = scmp.lt.s32.totalorder %s17_s9, %s17_s9 }
   0x5   :  { %p24_p3 = por %p23_p2, %p22_p1 }
   0x7   :  { %p25_p4 = pnand %p24_p3, %p18_p0 }
   0x9   :  { %28 = shalt.err (!%p25_p4)  }
   0xa   :  { %6 = dma.hbm_to_vmem [thread:$0]  %s47_s0, 1024, %s4_s8, [#allocation0] }
   0xb   :  { %29 = dma.done.wait [#allocation0], 1024  }
   0xc   :  { %30 = vsyncadd [#allocation0], 4294966272 }
   0xd   :  { %8 = vsyncpa [#allocation0], 1 }

// kernel: loss_fn.1
= control target key start
LH: loop header
LB: loop body
LE: loop exit
PB: predicated region body
PF: predicated region fallthrough
CT: control target
= control target key end

     0   :  { %7 = vsyncpa [#allocation4], 0  ;;  %s2668_s0 = inlined_call_operand.vmem [shape: f32[64,64], index: 0, kind: input, shape index: {}]   ;;  %s2669_s1 = inlined_call_operand.vmem [shape: f32[64,256], index: 1, kind: input, shape index: {}]   ;;  %s2670_s2 = inlined_call_operand.hbm [shape: f32[1,256], index: 2, kind: output, shape index: {}]  }
   0x1   :  { %9 = vsyncpa [#allocation4 + $0x1], 0  ;;  %s2118_s9 = smov 0   ;;  %s2120_s10 = smov 0  }
   0x2   :  { %s2122_s11 = smov 0   ;;  %s2124_s12 = smov 0  }
   0x3 LB: > { %s1710_s13 = sadd.s32 4294967295, %s2100_s12   ;;  %s1711_s14 = sadd.s32 4294967294, %s2100_s12   ;;  %s2100_s12 = sphi %s2124_s12, %s2678_s12   ;;  %s2096_s11 = sphi %s2122_s11, %s2677_s11   ;;  %s2092_s10 = sphi %s2120_s10, %s2676_s10   ;;  %s2088_s9 = sphi %s2118_s9, %s2675_s9  }
   0x4   : > { %s2141_s15 = sadd.s32 1, %s2100_s12   ;;  %s43_s16 = sadd.s32 1, %s2096_s11 }
   0x5   : > { %s40_s17 = ssub.s32 %s2100_s12, %s2141_s15  ;;  %p50_p0 = scmp.ne.s32.totalorder %s2096_s11, %s2092_s10 }
   0x6   : > { %p41_p1 = scmp.eq.s32.totalorder %s40_s17, 0  ;;  %p51_p2 = scmp.eq.s32.totalorder %s2100_s12, 0 }
   0x7   : > { %p80_p3 = scmp.eq.s32.totalorder %s1710_s13, 1  ;;  %p85_p4 = scmp.ne.s32.totalorder %s2092_s10, %s2088_s9 }
   0x8   : > { %s2154_s18 = scalar_select %p41_p1, %s2096_s11, %s43_s16  }
   0x9   : > { %p52_p5 = por %p51_p2, %p50_p0  ;;  %p2156_p6 = por %p80_p3, %p50_p0 }
   0xa   : > { %p86_p7 = scmp.eq.s32.totalorder %s1711_s14, 1  ;;  %p2671_p9 = scmp.ge.s32.totalorder %s2100_s12, 2 }
   0xc   : > { %p2160_p8 = por %p86_p7, %p85_p4  ;;  %105 = sbr.rel (%p2671_p9) target bundleno = 25 (0x19), region = 20 }
  0x11   : > { %108 = sbr.rel (!%p52_p5) target bundleno = 25 (0x19), region = 24  ;;  %s110_s21 = sand.u32 (%p52_p5), 1, %s2096_s11  }
  0x12   : > { %s1715_s22 = sshll.u32 (%p52_p5), %s2100_s12, 3  ;;  %s1714_s23 = sshll.u32 (%p52_p5), %s110_s21, 6 }
  0x13   : > { %s114_s26 = scalar_lea.vmem (%p52_p5), %s2669_s1, %s1715_s22  ;;  %s112_s27 = scalar_lea.vmem (%p52_p5), [#allocation2], %s1714_s23 }
  0x14   : > { %v157_v0 = vld [vmem:[%s114_s26] sm:$0xff] (%p52_p5)  ;;  %v159_v1 = vld [vmem:[%s114_s26 + $0x10] sm:$0xff] (%p52_p5) }
  0x15   : > { %v161_v2 = vld [vmem:[%s114_s26 + $0x20] sm:$0xff] (%p52_p5)  ;;  %158 = vst [vmem:[%s112_s27] sm:$0xff] (%p52_p5), %v157_v0  ;;  %160 = vst [vmem:[%s112_s27 + $0x8] sm:$0xff] (%p52_p5), %v159_v1  ;;  %v163_v3 = vld [vmem:[%s114_s26 + $0x30] sm:$0xff] (%p52_p5) }
  0x16   : > { %162 = vst [vmem:[%s112_s27 + $0x10] sm:$0xff] %v161_v2  ;;  %v165_v4 = vld [vmem:[%s114_s26 + $0x40] sm:$0xff]  ;;  %v167_v5 = vld [vmem:[%s114_s26 + $0x50] sm:$0xff]  ;;  %164 = vst [vmem:[%s112_s27 + $0x18] sm:$0xff] %v163_v3 }
  0x17   : > { %166 = vst [vmem:[%s112_s27 + $0x20] sm:$0xff] %v165_v4  ;;  %168 = vst [vmem:[%s112_s27 + $0x28] sm:$0xff] %v167_v5  ;;  %v169_v6 = vld [vmem:[%s114_s26 + $0x60] sm:$0xff]  ;;  %v171_v7 = vld [vmem:[%s114_s26 + $0x70] sm:$0xff] }
  0x18   : > { %170 = vst [vmem:[%s112_s27 + $0x30] sm:$0xff] %v169_v6  ;;  %172 = vst [vmem:[%s112_s27 + $0x38] sm:$0xff] %v171_v7 }
  0x19 PF: > { %p1716_p10 = scmp.ge.s32.totalorder %s2100_s12, 1  ;;  %p177_p11 = scmp.lt.s32.totalorder %s2100_s12, 3 }
  0x1b   : > { %p178_p12 = pnand %p1716_p10, %p177_p11 }
  0x1c   : > { %s2175_s28 = sand.u32 (!%p178_p12), 1, %s2092_s10   ;;  %s1718_s29 = sshll.u32 (!%p178_p12), %s1710_s13, 4 }
  0x1d   : > { %181 = sbr.rel (%p178_p12) target bundleno = 454 (0x1c6), region = 62  ;;  %s1717_s7 = sshll.u32 (!%p178_p12), %s2175_s28, 6 }
  0x1e   : > { %s186_s16 = scalar_lea.vmem (!%p178_p12), [#allocation2], %s1717_s7  ;;  %s203_s30 = scalar_lea.vmem (!%p178_p12), [#allocation3], %s2175_s28 }
  0x1f   : > { %s1650_s3 = sshll.u32 (!%p178_p12), %s203_s30, 4  ;;  %s1648_s6 = scalar_lea.hbm (!%p178_p12), %s2670_s2, %s1718_s29  ;;  %s1651_s3 = int_to_ptr.vmem [resolvable:$true] %s1650_s3 }
  0x20   : > { %s1638_s7 = scalar_lea.sflag (!%p178_p12), [#allocation4], %s2175_s28  ;;  %s2040_s8 = scalar_lea.vmem (!%p178_p12), %s1651_s3, 16 }
  0x21   : > { %p2041_p13 = scmp.ne.s32.totalorder (!%p178_p12), %s1651_s3, %s2040_s8  ;;  %s2102_s13 = smov (!%p178_p12), [#allocation3]  }
  0x22   : > { %v204_v8 = vld [vmem:[%s2668_s0] sm:$0xff]  ;;  %vm220_vm0 = vcmask 523264   ;;  %v205_v9 = vld [vmem:[%s2668_s0 + $0x8] sm:$0xff]  ;;  %v206_v10 = vld [vmem:[%s2668_s0 + $0x10] sm:$0xff]  ;;  %vm1088_vm1 = vcmask 1041408   ;;  %s2044_s14 = sshll.u32 %s2102_s13, 4  ;;  %s2045_s14 = int_to_ptr.vmem [resolvable:$false] %s2044_s14 }
  0x23   : > { %v222_v11 = vsel %vm220_vm0, %v204_v8, 0  ;;  %v225_v12 = vsel %vm220_vm0, %v205_v9, 0  ;;  %v2190_v13 = vsel %vm220_vm0, %v206_v10, 0  ;;  %v207_v14 = vld [vmem:[%s2668_s0 + $0x18] sm:$0xff]  ;;  %v218_v18 = vld [vmem:[%s186_s16 + $0x30] sm:$0xff]  ;;  %v217_v19 = vld [vmem:[%s186_s16 + $0x28] sm:$0xff]  ;;  %p2042_p0 = pnand %p2041_p13, %p2156_p6  ;;  %p2047_p2 = scmp.lt.s32.totalorder %s1651_s3, %s2045_s14 }
  0x24   : > { %v2195_v15 = vand.u32 4294901760, %v222_v11  ;;  %v2197_v16 = vand.u32 4294901760, %v225_v12  ;;  %v219_v17 = vld [vmem:[%s186_s16 + $0x38] sm:$0xff]  ;;  %v2200_v20 = vand.u32 4294901760, %v2190_v13  ;;  %v231_v21 = vsel %vm220_vm0, %v207_v14, 0  ;;  %v216_v25 = vld [vmem:[%s186_s16 + $0x20] sm:$0xff] }
  0x25   : > { %v2203_v22 = vand.u32 4294901760, %v219_v17  ;;  %v2205_v23 = vand.u32 4294901760, %v218_v18  ;;  %v2207_v24 = vand.u32 4294901760, %v217_v19  ;;  %v215_v26 = vld [vmem:[%s186_s16 + $0x18] sm:$0xff]  ;;  %v214_v27 = vld [vmem:[%s186_s16 + $0x10] sm:$0xff]  ;;  %v2213_v29 = vand.u32 4294901760, %v216_v25  ;;  %p2043_p1 = pneg %p2042_p0 }
  0x26   : > { %v2210_v28 = vsub.f32 %v222_v11, %v2195_v15  ;;  %1861 = vmatprep.mubr.f32.mxu1 %v2195_v15  ;;  %v2215_v30 = vand.u32 4294901760, %v215_v26  ;;  %v2217_v31 = vand.u32 4294901760, %v214_v27  ;;  %v213_v32 = vld [vmem:[%s186_s16 + $0x8] sm:$0xff]  ;;  %v212_v33 = vld [vmem:[%s186_s16] sm:$0xff]  ;;  %v2220_v34 = vsub.f32 %v225_v12, %v2197_v16  ;;  %v210_v4 = vld [vmem:[%s2668_s0 + $0x30] sm:$0xff]  ;;  %s2046_s16 = scalar_lea.vmem %s2045_s14, 32 }
  0x27   : > { %1817 = vmatprep.subr.mxu0 %v2203_v22  ;;  %v2224_v35 = vsub.f32 %v219_v17, %v2203_v22  ;;  %v2227_v36 = vsub.f32 %v218_v18, %v2205_v23  ;;  %v2230_v37 = vsub.f32 %v217_v19, %v2207_v24  ;;  %v2232_v38 = vand.u32 4294901760, %v231_v21  ;;  %v208_v47 = vld [vmem:[%s2668_s0 + $0x20] sm:$0xff]  ;;  %v209_v52 = vld [vmem:[%s2668_s0 + $0x28] sm:$0xff]  ;;  %p2048_p3 = scmp.lt.s32.totalorder %s2046_s16, %s2040_s8 }
  0x28   : > { %1818 = vmatpush3.msra.mxu0 %v2203_v22  ;;  %v2235_v39 = vand.u32 4294901760, %v213_v32  ;;  %v2237_v40 = vand.u32 4294901760, %v212_v33  ;;  %v2240_v41 = vsub.f32 %v216_v25, %v2213_v29  ;;  %v320_v42 = vand.u32 4294901760, %v2210_v28 }
  0x29   : > { %1819 = vmatprep.subr.mxu0 %v2205_v23  ;;  %v2245_v43 = vand.u32 4294901760, %v2224_v35  ;;  %v2248_v44 = vand.u32 4294901760, %v2227_v36  ;;  %v2251_v45 = vand.u32 4294901760, %v2230_v37  ;;  %v2254_v46 = vsub.f32 %v215_v26, %v2215_v30  ;;  %p2049_p4 = por %p2048_p3, %p2047_p2 }
  0x2a   : > { %1820 = vmatpush3.msra.mxu0 %v2205_v23  ;;  %v2261_v48 = vand.u32 4294901760, %v2240_v41  ;;  %v321_v49 = vsub.f32 %v2210_v28, %v320_v42  ;;  %v330_v50 = vand.u32 4294901760, %v2220_v34  ;;  %v2268_v51 = vsub.f32 %v214_v27, %v2217_v31 }
  0x2b   : > { %1821 = vmatprep.subr.mxu0 %v2207_v24  ;;  %v418_v53 = vsub.f32 %v2224_v35, %v2245_v43  ;;  %v425_v54 = vsub.f32 %v2227_v36, %v2248_v44  ;;  %v432_v55 = vsub.f32 %v2230_v37, %v2251_v45  ;;  %v2281_v56 = vand.u32 4294901760, %v2254_v46  ;;  %p2050_p5 = pnand %p2049_p4, %p2043_p1 }
  0x2c   : > { %1822 = vmatpush3.msra.mxu0 %v2207_v24  ;;  %v439_v57 = vsub.f32 %v2240_v41, %v2261_v48  ;;  %v322_v58 = vand.u32 4294901760, %v321_v49  ;;  %v234_v59 = vsel %vm220_vm0, %v208_v47, 0  ;;  %v2289_v62 = vand.u32 4294901760, %v2268_v51 }
  0x2d   : > { %1823 = vmatprep.subr.mxu0 %v2213_v29  ;;  %v419_v60 = vand.u32 4294901760, %v418_v53  ;;  %v426_v61 = vand.u32 4294901760, %v425_v54  ;;  %v237_v63 = vsel %vm220_vm0, %v209_v52, 0  ;;  %v433_v0 = vand.u32 4294901760, %v432_v55 }
  0x2e   : > { %1824 = vmatpush3.msra.mxu0 %v2213_v29  ;;  %1833 = vmatprep.mubr.f32.mxu0 %v322_v58  ;;  %v331_v1 = vsub.f32 %v2220_v34, %v330_v50  ;;  %v2298_v2 = vsub.f32 %v2190_v13, %v2200_v20  ;;  %v2301_v3 = vsub.f32 %v231_v21, %v2232_v38  ;;  %v2315_v8 = vand.u32 4294901760, %v234_v59  ;;  %v211_v13 = vld [vmem:[%s2668_s0 + $0x38] sm:$0xff] }
  0x2f   : > { %1825 = vmatprep.subr.mxu0 %v2215_v30  ;;  %1845 = vmatprep.subr.mxu1 %v419_v60  ;;  %v446_v5 = vsub.f32 %v2254_v46, %v2281_v56  ;;  %v2310_v6 = vsub.f32 %v213_v32, %v2235_v39  ;;  %v2313_v7 = vsub.f32 %v212_v33, %v2237_v40  ;;  %v440_v9 = vand.u32 4294901760, %v439_v57 }
  0x30   : > { %1826 = vmatpush3.msra.mxu0 %v2215_v30  ;;  %1846 = vmatpush3.msra.mxu1 %v419_v60  ;;  %v340_v10 = vand.u32 4294901760, %v2298_v2  ;;  %v350_v11 = vand.u32 4294901760, %v2301_v3  ;;  %v2320_v12 = vand.u32 4294901760, %v237_v63  ;;  %v453_v14 = vsub.f32 %v2268_v51, %v2289_v62 }
  0x31   : > { %1827 = vmatprep.subr.mxu0 %v2217_v31  ;;  %1847 = vmatprep.subr.mxu1 %v426_v61  ;;  %v2329_v17 = vand.u32 4294901760, %v2310_v6  ;;  %v2332_v18 = vsub.f32 %v234_v59, %v2315_v8  ;;  %v240_v19 = vsel %vm220_vm0, %v210_v4, 0  ;;  %v2340_v25 = vand.u32 4294901760, %v2313_v7 }
  0x32   : > { %1828 = vmatpush3.msra.mxu0 %v2217_v31  ;;  %1848 = vmatpush3.msra.mxu1 %v426_v61  ;;  %v341_v21 = vsub.f32 %v2298_v2, %v340_v10  ;;  %v2343_v26 = vsub.f32 %v237_v63, %v2320_v12  ;;  %v2345_v27 = vand.u32 4294901760, %v240_v19  ;;  %v332_v32 = vand.u32 4294901760, %v331_v1 }
  0x33   : > { %1829 = vmatprep.subr.mxu0 %v2235_v39  ;;  %1849 = vmatprep.subr.mxu1 %v433_v0  ;;  %v447_v33 = vand.u32 4294901760, %v446_v5  ;;  %v360_v47 = vand.u32 4294901760, %v2332_v18  ;;  %v243_v49 = vsel %vm220_vm0, %v211_v13, 0  ;;  %v351_v52 = vsub.f32 %v2301_v3, %v350_v11 }
  0x34   : > { %1830 = vmatpush3.msra.mxu0 %v2235_v39  ;;  %1850 = vmatpush3.msra.mxu1 %v433_v0  ;;  %v460_v53 = vsub.f32 %v2310_v6, %v2329_v17  ;;  %v454_v54 = vand.u32 4294901760, %v453_v14  ;;  %v370_v55 = vand.u32 4294901760, %v2343_v26  ;;  %v2359_v57 = vsub.f32 %v240_v19, %v2345_v27 }
  0x35   : > { %1831 = vmatprep.subr.mxu0 %v2237_v40  ;;  %1851 = vmatprep.subr.mxu1 %v440_v9  ;;  %v2361_v58 = vand.u32 4294901760, %v243_v49  ;;  %v342_v59 = vand.u32 4294901760, %v341_v21  ;;  %v467_v60 = vsub.f32 %v2313_v7, %v2340_v25  ;;  %v361_v61 = vsub.f32 %v2332_v18, %v360_v47 }
  0x36   : > { %1832 = vmatpush3.msra.mxu0 %v2237_v40  ;;  %1852 = vmatpush3.msra.mxu1 %v440_v9  ;;  %v352_v0 = vand.u32 4294901760, %v351_v52  ;;  %v461_v1 = vand.u32 4294901760, %v460_v53  ;;  %v371_v4 = vsub.f32 %v2343_v26, %v370_v55  ;;  %v380_v5 = vand.u32 4294901760, %v2359_v57 }
  0x37   : > { %1834 = vmatmul.mubr.f32.vlgmr.msra.gmra.mxu0 %v332_v32  ;;  %1853 = vmatprep.subr.mxu1 %v447_v33  ;;  %v2370_v63 = vsub.f32 %v243_v49, %v2361_v58  ;;  %v468_v9 = vand.u32 4294901760, %v467_v60  ;;  %v362_v13 = vand.u32 4294901760, %v361_v61 }
  0x38   : > { %1873 = vmatprep.subr.mxu0 %v2224_v35  ;;  %1854 = vmatpush3.msra.mxu1 %v447_v33  ;;  %v381_v19 = vsub.f32 %v2359_v57, %v380_v5 }
  0x39   : > { %1874 = vmatpush3.msra.mxu0 %v2224_v35  ;;  %1855 = vmatprep.subr.mxu1 %v454_v54  ;;  %v390_v14 = vand.u32 4294901760, %v2370_v63  ;;  %v372_v35 = vand.u32 4294901760, %v371_v4 }
  0x3a   : > { %1875 = vmatprep.subr.mxu0 %v2227_v36  ;;  %1836 = vmatprep.mubr.f32.mxu0 %v342_v59  ;;  %v382_v21 = vand.u32 4294901760, %v381_v19 }
  0x3b   : > { %1856 = vmatpush3.msra.mxu1 %v454_v54  ;;  %1876 = vmatpush3.msra.mxu0 %v2227_v36  ;;  %v391_v36 = vsub.f32 %v2370_v63, %v390_v14 }
  0x3c   : > { %1837 = vmatmul.mubr.f32.gmra.mxu0 %v352_v0  ;;  %1857 = vmatprep.subr.mxu1 %v461_v1 }
  0x3d   : > { %1877 = vmatprep.subr.mxu0 %v2230_v37  ;;  %1858 = vmatpush3.msra.mxu1 %v461_v1 }
  0x3e   : > { %1878 = vmatpush3.msra.mxu0 %v2230_v37  ;;  %1859 = vmatprep.subr.mxu1 %v468_v9  ;;  %v392_v37 = vand.u32 4294901760, %v391_v36 }
  0x3f   : > { %1879 = vmatprep.subr.mxu0 %v2240_v41  ;;  %1839 = vmatprep.mubr.f32.mxu0 %v362_v13 }
  0x40   : > { %1860 = vmatpush3.msra.mxu1 %v468_v9  ;;  %1880 = vmatpush3.msra.mxu0 %v2240_v41 }
  0x41   : > { %1840 = vmatmul.mubr.f32.gmra.mxu0 %v372_v35  ;;  %1862 = vmatmul.mubr.f32.vlgmr.msra.gmra.mxu1 %v2197_v16 }
  0x42   : > { %1881 = vmatprep.subr.mxu0 %v2254_v46  ;;  %1901 = vmatprep.subr.mxu1 %v2203_v22 }
  0x43   : > { %1882 = vmatpush3.msra.mxu0 %v2254_v46  ;;  %1902 = vmatpush3.msra.mxu1 %v2203_v22 }
  0x44   : > { %1883 = vmatprep.subr.mxu0 %v2268_v51  ;;  %1903 = vmatprep.subr.mxu1 %v2205_v23 }
  0x45   : > { %1842 = vmatprep.mubr.f32.mxu0 %v382_v21  ;;  %1864 = vmatprep.mubr.f32.mxu1 %v2200_v20 }
  0x46   : > { %1884 = vmatpush3.msra.mxu0 %v2268_v51  ;;  %1904 = vmatpush3.msra.mxu1 %v2205_v23 }
  0x47   : > { %1843 = vmatmul.mubr.f32.gmra.mxu0 %v392_v37  ;;  %1865 = vmatmul.mubr.f32.gmra.mxu1 %v2232_v38 }
  0x48   : > { %1885 = vmatprep.subr.mxu0 %v2310_v6  ;;  %1905 = vmatprep.subr.mxu1 %v2207_v24 }
  0x49   : > { %1886 = vmatpush3.msra.mxu0 %v2310_v6  ;;  %1906 = vmatpush3.msra.mxu1 %v2207_v24 }
  0x4a   : > { %1887 = vmatprep.subr.mxu0 %v2313_v7  ;;  %1907 = vmatprep.subr.mxu1 %v2213_v29 }
  0x4b   : > { %1867 = vmatprep.mubr.f32.mxu1 %v2315_v8  ;;  %1888 = vmatpush3.msra.mxu0 %v2313_v7 }
  0x4c   : > { %1889 = vmatprep.mubr.f32.mxu0 %v2210_v28  ;;  %1908 = vmatpush3.msra.mxu1 %v2213_v29 }
  0x4d   : > { %1868 = vmatmul.mubr.f32.gmra.mxu1 %v2320_v12  ;;  %1890 = vmatmul.mubr.f32.vlgmr.msra.gmra.mxu0 %v2220_v34 }
  0x4e   : > { %1909 = vmatprep.subr.mxu1 %v2215_v30  ;;  %1929 = vmatprep.subr.mxu0 %v2245_v43 }
  0x4f   : > { %1910 = vmatpush3.msra.mxu1 %v2215_v30  ;;  %1930 = vmatpush3.msra.mxu0 %v2245_v43 }
  0x50   : > { %1911 = vmatprep.subr.mxu1 %v2217_v31  ;;  %1931 = vmatprep.subr.mxu0 %v2248_v44 }
  0x51   : > { %1870 = vmatprep.mubr.f32.mxu1 %v2345_v27  ;;  %1892 = vmatprep.mubr.f32.mxu0 %v2298_v2 }
  0x52   : > { %1912 = vmatpush3.msra.mxu1 %v2217_v31  ;;  %1932 = vmatpush3.msra.mxu0 %v2248_v44 }
  0x53   : > { %1871 = vmatmul.mubr.f32.gmra.mxu1 %v2361_v58  ;;  %1893 = vmatmul.mubr.f32.gmra.mxu0 %v2301_v3 }
  0x54   : > { %1913 = vmatprep.subr.mxu1 %v2235_v39  ;;  %1933 = vmatprep.subr.mxu0 %v2251_v45 }
  0x55   : > { %1914 = vmatpush3.msra.mxu1 %v2235_v39  ;;  %1934 = vmatpush3.msra.mxu0 %v2251_v45 }
  0x56   : > { %1915 = vmatprep.subr.mxu1 %v2237_v40  ;;  %1935 = vmatprep.subr.mxu0 %v2261_v48 }
  0x57   : > { %1895 = vmatprep.mubr.f32.mxu0 %v2332_v18  ;;  %1916 = vmatpush3.msra.mxu1 %v2237_v40 }
  0x58   : > { %1917 = vmatprep.mubr.f32.mxu1 %v320_v42  ;;  %1936 = vmatpush3.msra.mxu0 %v2261_v48 }
  0x59   : > { %1896 = vmatmul.mubr.f32.gmra.mxu0 %v2343_v26  ;;  %1918 = vmatmul.mubr.f32.vlgmr.msra.gmra.mxu1 %v330_v50 }
  0x5a   : > { %1937 = vmatprep.subr.mxu0 %v2281_v56  ;;  %1957 = vmatprep.subr.mxu1 %v2203_v22 }
  0x5b   : > { %1938 = vmatpush3.msra.mxu0 %v2281_v56  ;;  %1958 = vmatpush3.msra.mxu1 %v2203_v22 }
  0x5c   : > { %1939 = vmatprep.subr.mxu0 %v2289_v62  ;;  %1959 = vmatprep.subr.mxu1 %v2205_v23 }
  0x5d   : > { %1898 = vmatprep.mubr.f32.mxu0 %v2359_v57  ;;  %1920 = vmatprep.mubr.f32.mxu1 %v340_v10 }
  0x5e   : > { %1940 = vmatpush3.msra.mxu0 %v2289_v62  ;;  %1960 = vmatpush3.msra.mxu1 %v2205_v23 }
  0x5f   : > { %1899 = vmatmul.mubr.f32.gmra.mxu0 %v2370_v63  ;;  %1921 = vmatmul.mubr.f32.gmra.mxu1 %v350_v11 }
  0x60   : > { %1941 = vmatprep.subr.mxu0 %v2329_v17  ;;  %1961 = vmatprep.subr.mxu1 %v2207_v24 }
  0x61   : > { %1942 = vmatpush3.msra.mxu0 %v2329_v17  ;;  %1962 = vmatpush3.msra.mxu1 %v2207_v24 }
  0x62   : > { %1943 = vmatprep.subr.mxu0 %v2340_v25  ;;  %1963 = vmatprep.subr.mxu1 %v2213_v29 }
  0x63   : > { %1923 = vmatprep.mubr.f32.mxu1 %v360_v47  ;;  %1944 = vmatpush3.msra.mxu0 %v2340_v25 }
  0x64   : > { %1945 = vmatprep.mubr.f32.mxu0 %v2195_v15  ;;  %1964 = vmatpush3.msra.mxu1 %v2213_v29 }
  0x65   : > { %1924 = vmatmul.mubr.f32.gmra.mxu1 %v370_v55  ;;  %1946 = vmatmul.mubr.f32.vlgmr.msra.gmra.mxu0 %v2197_v16 }
  0x66   : > { %1965 = vmatprep.subr.mxu1 %v2215_v30  ;;  %1926 = vmatprep.mubr.f32.mxu1 %v380_v5 }
  0x67   : > { %1966 = vmatpush3.msra.mxu1 %v2215_v30  ;;  %1948 = vmatprep.mubr.f32.mxu0 %v2200_v20 }
  0x68   : > { %1967 = vmatprep.subr.mxu1 %v2217_v31 }
  0x69   : > { %1968 = vmatpush3.msra.mxu1 %v2217_v31  ;;  %1949 = vmatmul.mubr.f32.gmra.mxu0 %v2232_v38 }
  0x6a   : > { %1927 = vmatmul.mubr.f32.gmra.mxu1 %v390_v14  ;;  %1969 = vmatprep.subr.mxu1 %v2235_v39 }
  0x6b   : > { %1970 = vmatpush3.msra.mxu1 %v2235_v39  ;;  %1951 = vmatprep.mubr.f32.mxu0 %v2315_v8 }
  0x6c   : > { %1971 = vmatprep.subr.mxu1 %v2237_v40  ;;  %1973 = vmatprep.mubr.f32.mxu1 %v2195_v15 }
  0x6d   : > { %1972 = vmatpush3.msra.mxu1 %v2237_v40  ;;  %1952 = vmatmul.mubr.f32.gmra.mxu0 %v2320_v12 }
  0x6e   : > { %1974 = vmatmul.mubr.f32.vlgmr.msra.gmra.mxu1 %v2197_v16  ;;  %1954 = vmatprep.mubr.f32.mxu0 %v2345_v27 }
  0x6f   : > { %1976 = vmatprep.mubr.f32.mxu1 %v2200_v20 }
  0x71   : > { %1955 = vmatmul.mubr.f32.gmra.mxu0 %v2361_v58 }
  0x72   : > { %1977 = vmatmul.mubr.f32.gmra.mxu1 %v2232_v38 }
  0x73   : > { %1979 = vmatprep.mubr.f32.mxu1 %v2315_v8 }
  0x76   : > { %1980 = vmatmul.mubr.f32.gmra.mxu1 %v2320_v12 }
  0x77   : > { %1982 = vmatprep.mubr.f32.mxu1 %v2345_v27 }
  0x7a   : > { %1983 = vmatmul.mubr.f32.gmra.mxu1 %v2361_v58 }
  0xf7   : > { %v1835_v15 = vpop.f32.mrf.mxu0 }
  0xf9   : > { %v324_v22 = vpop.f32.mrf.mxu0 }
  0xfc   : > { %v1838_v23 = vpop.f32.mrf.mxu0 }
  0xfe   : > { %v344_v16 = vpop.f32.mrf.mxu0 }
 0x101   : > { %v1841_v24 = vpop.f32.mrf.mxu0  ;;  %v1863_v28 = vpop.f32.mrf.mxu1 }
 0x102   : > { %v512_v8 = vadd.f32 %v1863_v28, %v1835_v15 }
 0x103   : > { %v364_v29 = vpop.f32.mrf.mxu0  ;;  %v505_v20 = vpop.f32.mrf.mxu1 }
 0x104   : > { %v506_v12 = vadd.f32 %v505_v20, %v324_v22 }
 0x107   : > { %v1844_v30 = vpop.f32.mrf.mxu0  ;;  %v1866_v31 = vpop.f32.mrf.mxu1 }
 0x108   : > { %v524_v49 = vadd.f32 %v1866_v31, %v1838_v23 }
 0x109   : > { %v384_v34 = vpop.f32.mrf.mxu0  ;;  %v517_v38 = vpop.f32.mrf.mxu1 }
 0x10a   : > { %v518_v53 = vadd.f32 %v517_v38, %v344_v16 }
 0x10d   : > { %v1869_v39 = vpop.f32.mrf.mxu1  ;;  %v1891_v40 = vpop.f32.mrf.mxu0 }
 0x10e   : > { %v643_v17 = vadd.f32 %v1891_v40, %v512_v8  ;;  %v536_v57 = vadd.f32 %v1869_v39, %v1841_v24 }
 0x10f   : > { %v529_v41 = vpop.f32.mrf.mxu1  ;;  %v635_v42 = vpop.f32.mrf.mxu0 }
 0x110   : > { %v636_v25 = vadd.f32 %v635_v42, %v506_v12  ;;  %v530_v58 = vadd.f32 %v529_v41, %v364_v29 }
 0x113   : > { %v1872_v43 = vpop.f32.mrf.mxu1  ;;  %v1894_v44 = vpop.f32.mrf.mxu0 }
 0x114   : > { %v548_v59 = vadd.f32 %v1872_v43, %v1844_v30  ;;  %v657_v60 = vadd.f32 %v1894_v44, %v524_v49 }
 0x115   : > { %v541_v45 = vpop.f32.mrf.mxu1  ;;  %v649_v46 = vpop.f32.mrf.mxu0 }
 0x116   : > { %v542_v9 = vadd.f32 %v541_v45, %v384_v34  ;;  %v650_v13 = vadd.f32 %v649_v46, %v518_v53 }
 0x119   : > { %v1897_v48 = vpop.f32.mrf.mxu0  ;;  %v1919_v50 = vpop.f32.mrf.mxu1 }
 0x11a   : > { %v774_v26 = vadd.f32 %v1919_v50, %v643_v17  ;;  %v671_v14 = vadd.f32 %v1897_v48, %v536_v57 }
 0x11b   : > { %v765_v51 = vpop.f32.mrf.mxu1  ;;  %v663_v56 = vpop.f32.mrf.mxu0 }
 0x11c   : > { %v766_v33 = vadd.f32 %v765_v51, %v636_v25  ;;  %v664_v22 = vadd.f32 %v663_v56, %v530_v58 }
 0x11f   : > { %v1922_v62 = vpop.f32.mrf.mxu1  ;;  %v1900_v2 = vpop.f32.mrf.mxu0 }
 0x120   : > { %v790_v35 = vadd.f32 %v1922_v62, %v657_v60  ;;  %v685_v31 = vadd.f32 %v1900_v2, %v548_v59 }
 0x121   : > { %v2494_v3 = vpop.f32.mrf.mxu1  ;;  %v677_v6 = vpop.f32.mrf.mxu0 }
 0x122   : > { %v678_v50 = vadd.f32 %v677_v6, %v542_v9  ;;  %v782_v58 = vadd.f32 %v2494_v3, %v650_v13 }
 0x125   : > { %v2496_v7 = vpop.f32.mrf.mxu1  ;;  %v1947_v11 = vpop.f32.mrf.mxu0 }
 0x126   : > { %v923_v47 = vadd.f32 %v1947_v11, %v774_v26 }
 0x127   : > { %v2498_v10 = vpop.f32.mrf.mxu1  ;;  %v916_v27 = vpop.f32.mrf.mxu0 }
 0x128   : > { %v917_v54 = vadd.f32 %v916_v27, %v766_v33  ;;  %v798_v3 = vadd.f32 %v2498_v10, %v664_v22 }
 0x129   : > { %v1950_v63 = vpop.f32.mrf.mxu0 }
 0x12a   : > { %v2500_v18 = vpop.f32.mrf.mxu1  ;;  %v935_v23 = vadd.f32 %v1950_v63, %v790_v35 }
 0x12b   : > { %v928_v33 = vpop.f32.mrf.mxu0  ;;  %v822_v13 = vadd.f32 %v2500_v18, %v685_v31 }
 0x12c   : > { %v2502_v32 = vpop.f32.mrf.mxu1 }
 0x12d   : > { %v1953_v9 = vpop.f32.mrf.mxu0  ;;  %v2522_v10 = vadd.f32 %v2502_v32, %v678_v50 }
 0x12e   : > { %v1975_v52 = vpop.f32.mrf.mxu1 }
 0x12f   : > { %v1044_v55 = vadd.f32 %v1975_v52, %v923_v47 }
 0x130   : > { %v1037_v61 = vpop.f32.mrf.mxu1 }
 0x131   : > { %v1153_v0 = vmul.f32 %v1044_v55, %v1044_v55  ;;  %v1166_v1 = vrot.slane %v1044_v55, 2  ;;  %v1180_v4 = vrot.slane %v1044_v55, 6  ;;  %v1038_v5 = vadd.f32 %v1037_v61, %v917_v54 }
 0x132   : > { %v1978_v15 = vpop.f32.mrf.mxu1 }
 0x133   : > { %v1155_v19 = vrot.slane %v1153_v0, 4  ;;  %v1168_v36 = vmul.f32 %v1166_v1, %v1044_v55  ;;  %v1182_v21 = vmul.f32 %v1180_v4, %v1044_v55  ;;  %v1083_v37 = vmul.f32 %v1038_v5, %v1038_v5 }
 0x134   : > { %v1097_v16 = vrot.slane %v1038_v5, 2  ;;  %v1111_v24 = vrot.slane %v1038_v5, 6  ;;  %v2504_v34 = vadd.f32 %v1978_v15, %v935_v23 }
 0x135   : > { %v1157_v28 = vadd.f32 %v1155_v19, %v1153_v0  ;;  %v1170_v29 = vrot.slane %v1168_v36, 4  ;;  %v1184_v20 = vrot.slane %v1182_v21, 4  ;;  %v1085_v30 = vrot.slane %v1083_v37, 4 }
 0x136   : > { %v1099_v38 = vmul.f32 %v1097_v16, %v1038_v5  ;;  %v1113_v39 = vmul.f32 %v1111_v24, %v1038_v5  ;;  %v1291_v6 = vmul.f32 %v2504_v34, %v2504_v34  ;;  %v806_v5 = vadd.f32 %v2496_v7, %v671_v14  ;;  %v940_v14 = vpop.f32.mrf.mxu0 }
 0x137   : > { %v1158_v40 = vsel %vm1088_vm1, %v1157_v28, 0.0  ;;  %v1172_v41 = vadd.f32 %v1170_v29, %v1168_v36  ;;  %v1186_v42 = vsub.f32 %v1182_v21, %v1184_v20  ;;  %v1198_v43 = vrot.slane %v1157_v28, 2 }
 0x138   : > { %v1159_v44 = vrot.slane %v1158_v40, 4  ;;  %v1087_v45 = vadd.f32 %v1085_v30, %v1083_v37  ;;  %v1101_v46 = vrot.slane %v1099_v38, 4  ;;  %v1115_v48 = vrot.slane %v1113_v39, 4 }
 0x139   : > { %v1173_v51 = vsel %vm1088_vm1, %v1172_v41, 0.0  ;;  %v1188_v56 = vrot.slane %v1186_v42, 4  ;;  %v1200_v62 = vsel %vm1088_vm1, %v1198_v43, 0.0  ;;  %v1293_v36 = vrot.slane %v1291_v6, 4 }
 0x13a   : > { %v1160_v2 = vadd.f32 %v1159_v44, %v1158_v40  ;;  %v1174_v8 = vrot.slane %v1173_v51, 4  ;;  %v1201_v11 = vrot.slane %v1200_v62, 4  ;;  %v1089_v12 = vsel %vm1088_vm1, %v1087_v45, 0.0 }
 0x13b   : > { %v1190_v17 = vsel %vm1088_vm1, %v1188_v56, 0.0  ;;  %v1090_v25 = vrot.slane %v1089_v12, 4  ;;  %v1103_v26 = vadd.f32 %v1101_v46, %v1099_v38  ;;  %v1117_v27 = vsub.f32 %v1113_v39, %v1115_v48  ;;  %v1956_v56 = vpop.f32.mrf.mxu0 }
 0x13c   : > { %v1175_v47 = vadd.f32 %v1174_v8, %v1173_v51  ;;  %v1191_v49 = vrot.slane %v1190_v17, 4  ;;  %v1202_v52 = vadd.f32 %v1201_v11, %v1200_v62  ;;  %v1129_v57 = vrot.slane %v1087_v45, 2 }
 0x13d   : > { %v1091_v53 = vadd.f32 %v1090_v25, %v1089_v12  ;;  %v1104_v54 = vsel %vm1088_vm1, %v1103_v26, 0.0  ;;  %v1119_v55 = vrot.slane %v1117_v27, 4  ;;  %v1161_v59 = vrot.slane %v1160_v2, 2 }
 0x13e   : > { %v1176_v60 = vrot.slane %v1175_v47, 2  ;;  %v1192_v61 = vadd.f32 %v1191_v49, %v1190_v17  ;;  %v1203_v63 = vrot.slane %v1202_v52, 2  ;;  %v1105_v0 = vrot.slane %v1104_v54, 4 }
 0x13f   : > { %v1121_v1 = vsel %vm1088_vm1, %v1119_v55, 0.0  ;;  %v1131_v4 = vsel %vm1088_vm1, %v1129_v57, 0.0  ;;  %v1092_v19 = vrot.slane %v1091_v53, 2  ;;  %v1162_v16 = vadd.f32 %v1161_v59, %v1160_v2 }
 0x140   : > { %v1193_v35 = vrot.slane %v1192_v61, 2  ;;  %v1177_v21 = vadd.f32 %v1176_v60, %v1175_v47  ;;  %v1106_v37 = vadd.f32 %v1105_v0, %v1104_v54  ;;  %v1122_v15 = vrot.slane %v1121_v1, 4  ;;  %v1049_v47 = vpop.f32.mrf.mxu1 }
 0x141   : > { %v1132_v23 = vrot.slane %v1131_v4, 4  ;;  %v1204_v28 = vadd.f32 %v1203_v63, %v1202_v52  ;;  %v929_v38 = vadd.f32 %v928_v33, %v782_v58  ;;  %v1295_v39 = vadd.f32 %v1293_v36, %v1291_v6 }
 0x142   : > { %v1194_v24 = vadd.f32 %v1193_v35, %v1192_v61  ;;  %v1107_v29 = vrot.slane %v1106_v37, 2  ;;  %v1123_v20 = vadd.f32 %v1122_v15, %v1121_v1  ;;  %v1304_v40 = vrot.slane %v2504_v34, 2 }
 0x143   : > { %v1133_v30 = vadd.f32 %v1132_v23, %v1131_v4  ;;  %v1178_v41 = vrot.slane %v1177_v21, 1  ;;  %v1093_v42 = vadd.f32 %v1092_v19, %v1091_v53  ;;  %v947_v18 = vadd.f32 %v1953_v9, %v806_v5 }
 0x144   : > { %v1195_v7 = vrot.slane %v1194_v24, 1  ;;  %v1124_v43 = vrot.slane %v1123_v20, 2  ;;  %v1108_v22 = vadd.f32 %v1107_v29, %v1106_v37  ;;  %v1296_v31 = vsel %vm1088_vm1, %v1295_v39, 0.0 }
 0x145   : > { %v1134_v44 = vrot.slane %v1133_v30, 2  ;;  %v1163_v45 = vrot.slane %v1162_v16, 1  ;;  %v1205_v48 = vrot.slane %v1204_v28, 1  ;;  %v1297_v62 = vrot.slane %v1296_v31, 4 }
 0x146   : > { %v1196_v46 = vadd.f32 %v1195_v7, %v1194_v24  ;;  %v1125_v51 = vadd.f32 %v1124_v43, %v1123_v20  ;;  %v1306_v2 = vmul.f32 %v1304_v40, %v2504_v34  ;;  %v1318_v8 = vrot.slane %v2504_v34, 6  ;;  %v1981_v24 = vpop.f32.mrf.mxu1 }
 0x147   : > { %v1336_v11 = vrot.slane %v1295_v39, 2  ;;  %v1179_v12 = vadd.f32 %v1178_v41, %v1177_v21  ;;  %v2527_v17 = vadd.f32 %v940_v14, %v798_v3  ;;  %v1094_v32 = vrot.slane %v1093_v42, 1 }
 0x148   : > { %v1135_v50 = vadd.f32 %v1134_v44, %v1133_v30  ;;  %v1109_v25 = vrot.slane %v1108_v22, 1  ;;  %v1308_v26 = vrot.slane %v1306_v2, 4  ;;  %v1320_v27 = vmul.f32 %v1318_v8, %v2504_v34 }
 0x149   : > { %v1338_v33 = vsel %vm1088_vm1, %v1336_v11, 0.0  ;;  %v1164_v49 = vadd.f32 %v1163_v45, %v1162_v16  ;;  %v1206_v52 = vadd.f32 %v1205_v48, %v1204_v28  ;;  %v1126_v6 = vrot.slane %v1125_v51, 1 }
 0x14a   : > { %v2531_v53 = vadd.f32 %v1956_v56, %v822_v13  ;;  %v1209_v54 = vmul.f32 %v1196_v46, %v1196_v46  ;;  %v1298_v55 = vadd.f32 %v1297_v62, %v1296_v31  ;;  %v1310_v57 = vadd.f32 %v1308_v26, %v1306_v2 }
 0x14b   : > { %v1322_v58 = vrot.slane %v1320_v27, 4  ;;  %v1095_v59 = vadd.f32 %v1094_v32, %v1093_v42  ;;  %v1136_v60 = vrot.slane %v1135_v50, 1  ;;  %v1339_v61 = vrot.slane %v1338_v33, 4 }
 0x14c   : > { %v1050_v63 = vadd.f32 %v1049_v47, %v929_v38  ;;  %v1208_v0 = vmul.f32 %v1179_v12, %v1179_v12  ;;  %v1110_v1 = vadd.f32 %v1109_v25, %v1108_v22  ;;  %v1311_v34 = vsel %vm1088_vm1, %v1310_v57, 0.0 }
 0x14d   : > { %v1324_v4 = vsub.f32 %v1320_v27, %v1322_v58  ;;  %v1207_v5 = vmul.f32 %v1206_v52, %v1164_v49  ;;  %v1127_v9 = vadd.f32 %v1126_v6, %v1125_v51  ;;  %v1312_v35 = vrot.slane %v1311_v34, 4 }
 0x14e   : > { %v1222_v19 = vmul.f32 %v1050_v63, %v1050_v63  ;;  %v1210_v36 = vadd.f32 %v1209_v54, %v1208_v0  ;;  %v1299_v21 = vrot.slane %v1298_v55, 2  ;;  %v1235_v15 = vrot.slane %v1050_v63, 2 }
 0x14f   : > { %v1326_v37 = vrot.slane %v1324_v4, 4  ;;  %v1137_v23 = vadd.f32 %v1136_v60, %v1135_v50  ;;  %v1313_v3 = vadd.f32 %v1312_v35, %v1311_v34  ;;  %v1340_v13 = vadd.f32 %v1339_v61, %v1338_v33 }
 0x150   : > { %v1224_v16 = vrot.slane %v1222_v19, 4  ;;  %v1139_v28 = vmul.f32 %v1110_v1, %v1110_v1  ;;  %v1237_v20 = vmul.f32 %v1235_v15, %v1050_v63  ;;  %v1249_v30 = vrot.slane %v1050_v63, 6 }
 0x151   : > { %v1328_v29 = vsel %vm1088_vm1, %v1326_v37, 0.0  ;;  %v1140_v38 = vmul.f32 %v1127_v9, %v1127_v9  ;;  %v1314_v7 = vrot.slane %v1313_v3, 2  ;;  %v1300_v40 = vadd.f32 %v1299_v21, %v1298_v55 }
 0x152   : > { %v1329_v14 = vrot.slane %v1328_v29, 4  ;;  %v1226_v39 = vadd.f32 %v1224_v16, %v1222_v19  ;;  %v1239_v41 = vrot.slane %v1237_v20, 4  ;;  %v1251_v42 = vmul.f32 %v1249_v30, %v1050_v63  ;;  %v1061_v30 = vpop.f32.mrf.mxu1 }
 0x153   : > { %v1068_v43 = vadd.f32 %v1981_v24, %v947_v18  ;;  %v1211_v44 = vsub.f32 %v1207_v5, %v1210_v36  ;;  %v1341_v31 = vrot.slane %v1340_v13, 2  ;;  %v1138_v46 = vmul.f32 %v1137_v23, %v1095_v59 }
 0x154   : > { %v1330_v22 = vadd.f32 %v1329_v14, %v1328_v29  ;;  %v1227_v45 = vsel %vm1088_vm1, %v1226_v39, 0.0  ;;  %v1315_v48 = vadd.f32 %v1314_v7, %v1313_v3  ;;  %v1241_v51 = vadd.f32 %v1239_v41, %v1237_v20  ;;  %v952_v7 = vpop.f32.mrf.mxu0 }
 0x155   : > { %v1253_v56 = vrot.slane %v1251_v42, 4  ;;  %v1228_v2 = vrot.slane %v1227_v45, 4  ;;  %v1267_v8 = vrot.slane %v1226_v39, 2  ;;  %v1429_v11 = vmul.f32 %v1068_v43, %v1068_v43 }
 0x156   : > { %v1331_v62 = vrot.slane %v1330_v22, 2  ;;  %v1141_v12 = vadd.f32 %v1140_v38, %v1139_v28  ;;  %v1301_v32 = vrot.slane %v1300_v40, 1  ;;  %v1242_v50 = vsel %vm1088_vm1, %v1241_v51, 0.0 }
 0x157   : > { %v1255_v25 = vsub.f32 %v1251_v42, %v1253_v56  ;;  %v1342_v18 = vadd.f32 %v1341_v31, %v1340_v13  ;;  %v1243_v27 = vrot.slane %v1242_v50, 4  ;;  %v1269_v33 = vsel %vm1088_vm1, %v1267_v8, 0.0 }
 0x158   : > { %v1332_v26 = vadd.f32 %v1331_v62, %v1330_v22  ;;  %v1316_v47 = vrot.slane %v1315_v48, 1  ;;  %v1270_v52 = vrot.slane %v1269_v33, 4  ;;  %v1431_v6 = vrot.slane %v1429_v11, 4 }
 0x159   : > { %v1257_v49 = vrot.slane %v1255_v25, 4  ;;  %v1229_v55 = vadd.f32 %v1228_v2, %v1227_v45  ;;  %v1244_v57 = vadd.f32 %v1243_v27, %v1242_v50  ;;  %v1442_v58 = vrot.slane %v1068_v43, 2  ;;  %v1984_v2 = vpop.f32.mrf.mxu1 }
 0x15a   : > { %v1333_v54 = vrot.slane %v1332_v26, 1  ;;  %v1142_v59 = vsub.f32 %v1138_v46, %v1141_v12  ;;  %v1271_v61 = vadd.f32 %v1270_v52, %v1269_v33  ;;  %v1433_v63 = vadd.f32 %v1431_v6, %v1429_v11 }
 0x15b   : > { %v1259_v60 = vsel %vm1088_vm1, %v1257_v49, 0.0  ;;  %v1343_v1 = vrot.slane %v1342_v18, 1  ;;  %v1444_v4 = vmul.f32 %v1442_v58, %v1068_v43  ;;  %v1212_v5 = vmul.f32 4.0, %v1211_v44 }
 0x15c   : > { %v1334_v0 = vadd.f32 %v1333_v54, %v1332_v26  ;;  %v1260_v34 = vrot.slane %v1259_v60, 4  ;;  %v1317_v9 = vadd.f32 %v1316_v47, %v1315_v48  ;;  %v1434_v35 = vsel %vm1088_vm1, %v1433_v63, 0.0 }
 0x15d   : > { %v1456_v19 = vrot.slane %v1068_v43, 6  ;;  %v1230_v36 = vrot.slane %v1229_v55, 2  ;;  %v1245_v21 = vrot.slane %v1244_v57, 2  ;;  %v1272_v15 = vrot.slane %v1271_v61, 2 }
 0x15e   : > { %v1261_v37 = vadd.f32 %v1260_v34, %v1259_v60  ;;  %v1302_v23 = vadd.f32 %v1301_v32, %v1300_v40  ;;  %v1347_v3 = vmul.f32 %v1334_v0, %v1334_v0  ;;  %v1446_v13 = vrot.slane %v1444_v4, 4 }
 0x15f   : > { %v1458_v16 = vmul.f32 %v1456_v19, %v1068_v43  ;;  %v1143_v24 = vmul.f32 4.0, %v1142_v59  ;;  %v1344_v28 = vadd.f32 %v1343_v1, %v1342_v18  ;;  %v1435_v20 = vrot.slane %v1434_v35, 4 }
 0x160   : > { %v1262_v29 = vrot.slane %v1261_v37, 2  ;;  %v1346_v38 = vmul.f32 %v1317_v9, %v1317_v9  ;;  %v1448_v14 = vadd.f32 %v1446_v13, %v1444_v4  ;;  %v1474_v41 = vrot.slane %v1433_v63, 2 }
 0x161   : > { %v1460_v39 = vrot.slane %v1458_v16, 4  ;;  %v1231_v42 = vadd.f32 %v1230_v36, %v1229_v55  ;;  %v1246_v44 = vadd.f32 %v1245_v21, %v1244_v57  ;;  %v1273_v31 = vadd.f32 %v1272_v15, %v1271_v61 }
 0x162   : > { %v1263_v22 = vadd.f32 %v1262_v29, %v1261_v37  ;;  %v1348_v45 = vadd.f32 %v1347_v3, %v1346_v38  ;;  %v1449_v40 = vsel %vm1088_vm1, %v1448_v14, 0.0  ;;  %v1476_v43 = vsel %vm1088_vm1, %v1474_v41, 0.0 }
 0x163   : > { %v1462_v46 = vsub.f32 %v1458_v16, %v1460_v39  ;;  %v2542_v48 = vmax.f32 %v1212_v5, 1.1754944e-38  ;;  %v2545_v51 = vadd.f32 %v952_v7, %v2522_v10  ;;  %v1436_v62 = vadd.f32 %v1435_v20, %v1434_v35 }
 0x164   : > { %v1264_v56 = vrot.slane %v1263_v22, 1  ;;  %v1345_v8 = vmul.f32 %v1344_v28, %v1302_v23  ;;  %v1450_v11 = vrot.slane %v1449_v40, 4  ;;  %v1477_v32 = vrot.slane %v1476_v43, 4 }
 0x165   : > { %v1464_v12 = vrot.slane %v1462_v46, 4  ;;  %v2547_v50 = vmax.f32 %v1143_v24, 1.1754944e-38  ;;  %v1232_v25 = vrot.slane %v1231_v42, 1  ;;  %v1247_v26 = vrot.slane %v1246_v44, 1 }
 0x166   : > { %v1062_v18 = vadd.f32 %v1061_v30, %v2527_v17  ;;  %v1349_v27 = vsub.f32 %v1345_v8, %v1348_v45  ;;  %v1274_v33 = vrot.slane %v1273_v31, 1  ;;  %v2552_v10 = vadd.f32 %v1984_v2, %v2531_v53 }
 0x167   : > { %v1466_v47 = vsel %vm1088_vm1, %v1464_v12, 0.0  ;;  %v1265_v49 = vadd.f32 %v1264_v56, %v1263_v22  ;;  %v1437_v52 = vrot.slane %v1436_v62, 2  ;;  %v1451_v55 = vadd.f32 %v1450_v11, %v1449_v40 }
 0x168   : > { %v1467_v6 = vrot.slane %v1466_v47, 4  ;;  %v1360_v54 = vmul.f32 %v1062_v18, %v1062_v18  ;;  %v1478_v57 = vadd.f32 %v1477_v32, %v1476_v43  ;;  %v1373_v58 = vrot.slane %v1062_v18, 2 }
 0x169   : > { %v1387_v59 = vrot.slane %v1062_v18, 6  ;;  %v1233_v60 = vadd.f32 %v1232_v25, %v1231_v42  ;;  %v1248_v61 = vadd.f32 %v1247_v26, %v1246_v44  ;;  %v1275_v17 = vadd.f32 %v1274_v33, %v1273_v31 }
 0x16a   : > { %v1468_v63 = vadd.f32 %v1467_v6, %v1466_v47  ;;  %v1362_v0 = vrot.slane %v1360_v54, 4  ;;  %v1375_v1 = vmul.f32 %v1373_v58, %v1062_v18  ;;  %v1567_v4 = vmul.f32 %v2552_v10, %v2552_v10 }
 0x16b   : > { %v1389_v34 = vmul.f32 %v1387_v59, %v1062_v18  ;;  %v2556_v53 = vmul.f32 4.0, %v1349_v27  ;;  %v1278_v5 = vmul.f32 %v1265_v49, %v1265_v49  ;;  %v1438_v9 = vadd.f32 %v1437_v52, %v1436_v62 }
 0x16c   : > { %v1364_v35 = vadd.f32 %v1362_v0, %v1360_v54  ;;  %v1452_v19 = vrot.slane %v1451_v55, 2  ;;  %v1479_v36 = vrot.slane %v1478_v57, 2  ;;  %v1377_v21 = vrot.slane %v1375_v1, 4 }
 0x16d   : > { %v1391_v37 = vrot.slane %v1389_v34, 4  ;;  %v1277_v15 = vmul.f32 %v1248_v61, %v1248_v61  ;;  %v1469_v23 = vrot.slane %v1468_v63, 2  ;;  %v1276_v16 = vmul.f32 %v1275_v17, %v1233_v60 }
 0x16e   : > { %v1365_v3 = vsel %vm1088_vm1, %v1364_v35, 0.0  ;;  %v1405_v13 = vrot.slane %v1364_v35, 2  ;;  %v1379_v28 = vadd.f32 %v1377_v21, %v1375_v1  ;;  %v1569_v29 = vrot.slane %v1567_v4, 4 }
 0x16f   : > { %v1366_v24 = vrot.slane %v1365_v3, 4  ;;  %v1279_v20 = vadd.f32 %v1278_v5, %v1277_v15  ;;  %v1439_v30 = vrot.slane %v1438_v9, 1  ;;  %v1393_v38 = vsub.f32 %v1389_v34, %v1391_v37  ;;  %v1073_v15 = vpop.f32.mrf.mxu1 }
 0x170   : > { %v1407_v7 = vsel %vm1088_vm1, %v1405_v13, 0.0  ;;  %v1453_v14 = vadd.f32 %v1452_v19, %v1451_v55  ;;  %v1480_v39 = vadd.f32 %v1479_v36, %v1478_v57  ;;  %v1380_v42 = vsel %vm1088_vm1, %v1379_v28, 0.0 }
 0x171   : > { %v1367_v41 = vadd.f32 %v1366_v24, %v1365_v3  ;;  %v1470_v44 = vadd.f32 %v1469_v23, %v1468_v63  ;;  %v1381_v22 = vrot.slane %v1380_v42, 4  ;;  %v1395_v31 = vrot.slane %v1393_v38, 4 }
 0x172   : > { %v1408_v45 = vrot.slane %v1407_v7, 4  ;;  %v1571_v46 = vadd.f32 %v1569_v29, %v1567_v4  ;;  %v1580_v43 = vrot.slane %v2552_v10, 2  ;;  %v1594_v56 = vrot.slane %v2552_v10, 6 }
 0x173   : > { %v1368_v40 = vrot.slane %v1367_v41, 2  ;;  %v1280_v62 = vsub.f32 %v1276_v16, %v1279_v20  ;;  %v1382_v2 = vadd.f32 %v1381_v22, %v1380_v42  ;;  %v1397_v8 = vsel %vm1088_vm1, %v1395_v31, 0.0 }
 0x174   : > { %v1409_v11 = vadd.f32 %v1408_v45, %v1407_v7  ;;  %v2564_v12 = vadd.f32 %v1439_v30, %v1438_v9  ;;  %v1454_v32 = vrot.slane %v1453_v14, 1  ;;  %v1398_v25 = vrot.slane %v1397_v8, 4 }
 0x175   : > { %v1582_v26 = vmul.f32 %v1580_v43, %v2552_v10  ;;  %v1471_v18 = vrot.slane %v1470_v44, 1  ;;  %v1369_v27 = vadd.f32 %v1368_v40, %v1367_v41  ;;  %v1383_v33 = vrot.slane %v1382_v2, 2 }
 0x176   : > { %v1410_v47 = vrot.slane %v1409_v11, 2  ;;  %v1399_v49 = vadd.f32 %v1398_v25, %v1397_v8  ;;  %v1572_v52 = vsel %vm1088_vm1, %v1571_v46, 0.0  ;;  %v1596_v54 = vmul.f32 %v1594_v56, %v2552_v10 }
 0x177   : > { %v1584_v6 = vrot.slane %v1582_v26, 4  ;;  %v1281_v55 = vmul.f32 4.0, %v1280_v62  ;;  %v1481_v57 = vrot.slane %v1480_v39, 1  ;;  %v1384_v58 = vadd.f32 %v1383_v33, %v1382_v2 }
 0x178   : > { %v1411_v59 = vadd.f32 %v1410_v47, %v1409_v11  ;;  %v1455_v60 = vadd.f32 %v1454_v32, %v1453_v14  ;;  %v1400_v61 = vrot.slane %v1399_v49, 2  ;;  %v1598_v0 = vrot.slane %v1596_v54, 4 }
 0x179   : > { %v1586_v63 = vadd.f32 %v1584_v6, %v1582_v26  ;;  %v1472_v17 = vadd.f32 %v1471_v18, %v1470_v44  ;;  %v1370_v1 = vrot.slane %v1369_v27, 1  ;;  %v1385_v34 = vrot.slane %v1384_v58, 1 }
 0x17a   : > { %v1573_v4 = vrot.slane %v1572_v52, 4  ;;  %v1401_v5 = vadd.f32 %v1400_v61, %v1399_v49  ;;  %v1600_v35 = vsub.f32 %v1596_v54, %v1598_v0  ;;  %v1612_v19 = vrot.slane %v1571_v46, 2 }
 0x17b   : > { %v1587_v9 = vsel %vm1088_vm1, %v1586_v63, 0.0  ;;  %v2570_v36 = vmax.f32 %v1281_v55, 1.1754944e-38  ;;  %v1482_v10 = vadd.f32 %v1481_v57, %v1480_v39  ;;  %v1386_v21 = vadd.f32 %v1385_v34, %v1384_v58 }
 0x17c   : > { %v1412_v37 = vrot.slane %v1411_v59, 1  ;;  %v1402_v23 = vrot.slane %v1401_v5, 1  ;;  %v1588_v3 = vrot.slane %v1587_v9, 4  ;;  %v1602_v13 = vrot.slane %v1600_v35, 4 }
 0x17d   : > { %v1614_v16 = vsel %vm1088_vm1, %v1612_v19, 0.0  ;;  %v1485_v24 = vmul.f32 %v1472_v17, %v1472_v17  ;;  %v1371_v28 = vadd.f32 %v1370_v1, %v1369_v27  ;;  %v1574_v29 = vadd.f32 %v1573_v4, %v1572_v52 }
 0x17e   : > { %v1615_v20 = vrot.slane %v1614_v16, 4  ;;  %v1403_v30 = vadd.f32 %v1402_v23, %v1401_v5  ;;  %v1589_v38 = vadd.f32 %v1588_v3, %v1587_v9  ;;  %v1604_v7 = vsel %vm1088_vm1, %v1602_v13, 0.0 }
 0x17f   : > { %v1074_v14 = vadd.f32 %v1073_v15, %v2545_v51  ;;  %v1413_v41 = vadd.f32 %v1412_v37, %v1411_v59  ;;  %v1415_v39 = vmul.f32 %v1386_v21, %v1386_v21  ;;  %v1605_v42 = vrot.slane %v1604_v7, 4 }
 0x180   : > { %v1616_v44 = vadd.f32 %v1615_v20, %v1614_v16  ;;  %v1416_v22 = vmul.f32 %v1403_v30, %v1403_v30  ;;  %v1590_v31 = vrot.slane %v1589_v38, 2  ;;  %v1575_v46 = vrot.slane %v1574_v29, 2 }
 0x181   : > { %v1498_v45 = vmul.f32 %v1074_v14, %v1074_v14  ;;  %v1511_v40 = vrot.slane %v1074_v14, 2  ;;  %v1606_v43 = vadd.f32 %v1605_v42, %v1604_v7  ;;  %v1525_v62 = vrot.slane %v1074_v14, 6 }
 0x182   : > { %v1617_v56 = vrot.slane %v1616_v44, 2  ;;  %v1417_v2 = vadd.f32 %v1416_v22, %v1415_v39  ;;  %v1591_v8 = vadd.f32 %v1590_v31, %v1589_v38  ;;  %v1484_v25 = vmul.f32 %v1455_v60, %v1455_v60 }
 0x183   : > { %v1500_v11 = vrot.slane %v1498_v45, 4  ;;  %v1513_v32 = vmul.f32 %v1511_v40, %v1074_v14  ;;  %v1414_v26 = vmul.f32 %v1413_v41, %v1371_v28  ;;  %v1607_v18 = vrot.slane %v1606_v43, 2 }
 0x184   : > { %v1527_v51 = vmul.f32 %v1525_v62, %v1074_v14  ;;  %v1592_v27 = vrot.slane %v1591_v8, 1  ;;  %v1618_v33 = vadd.f32 %v1617_v56, %v1616_v44  ;;  %v1483_v52 = vmul.f32 %v1482_v10, %v2564_v12 }
 0x185   : > { %v1502_v47 = vadd.f32 %v1500_v11, %v1498_v45  ;;  %v1515_v49 = vrot.slane %v1513_v32, 4  ;;  %v1486_v6 = vadd.f32 %v1485_v24, %v1484_v25  ;;  %v1608_v54 = vadd.f32 %v1607_v18, %v1606_v43 }
 0x186   : > { %v1529_v55 = vrot.slane %v1527_v51, 4  ;;  %v1418_v57 = vsub.f32 %v1414_v26, %v1417_v2  ;;  %v1576_v58 = vadd.f32 %v1575_v46, %v1574_v29  ;;  %2024 = vrsqrt.f32 %v2547_v50 }
 0x187   : > { %v1503_v59 = vsel %vm1088_vm1, %v1502_v47, 0.0  ;;  %v1517_v61 = vadd.f32 %v1515_v49, %v1513_v32  ;;  %v1609_v63 = vrot.slane %v1608_v54, 1  ;;  %v1593_v17 = vadd.f32 %v1592_v27, %v1591_v8 }
 0x188   : > { %v1504_v0 = vrot.slane %v1503_v59, 4  ;;  %v1531_v60 = vsub.f32 %v1527_v51, %v1529_v55  ;;  %v1619_v1 = vrot.slane %v1618_v33, 1  ;;  %v1543_v4 = vrot.slane %v1502_v47, 2 }
 0x189   : > { %v1518_v34 = vsel %vm1088_vm1, %v1517_v61, 0.0  ;;  %v1487_v5 = vsub.f32 %v1483_v52, %v1486_v6  ;;  %v1610_v12 = vadd.f32 %v1609_v63, %v1608_v54  ;;  %v1419_v19 = vmul.f32 4.0, %v1418_v57 }
 0x18a   : > { %v1505_v9 = vadd.f32 %v1504_v0, %v1503_v59  ;;  %v1519_v35 = vrot.slane %v1518_v34, 4  ;;  %v1577_v10 = vrot.slane %v1576_v58, 1  ;;  %v1533_v21 = vrot.slane %v1531_v60, 4 }
 0x18b   : > { %v1545_v37 = vsel %vm1088_vm1, %v1543_v4, 0.0  ;;  %v1623_v15 = vmul.f32 %v1610_v12, %v1610_v12  ;;  %2026 = vrsqrt.f32 %v2542_v48  ;;  %v1620_v13 = vadd.f32 %v1619_v1, %v1618_v33 }
 0x18c   : > { %v1520_v23 = vadd.f32 %v1519_v35, %v1518_v34  ;;  %v1546_v3 = vrot.slane %v1545_v37, 4  ;;  %v1622_v16 = vmul.f32 %v1593_v17, %v1593_v17  ;;  %v1535_v24 = vsel %vm1088_vm1, %v1533_v21, 0.0 }
 0x18d   : > { %2028 = vrsqrt.f32 %v2570_v36  ;;  %v2584_v28 = vmax.f32 %v2556_v53, 1.1754944e-38  ;;  %v1506_v29 = vrot.slane %v1505_v9, 2  ;;  %v1536_v30 = vrot.slane %v1535_v24, 4 }
 0x18e   : > { %v1521_v20 = vrot.slane %v1520_v23, 2  ;;  %v1578_v38 = vadd.f32 %v1577_v10, %v1576_v58  ;;  %v1624_v7 = vadd.f32 %v1623_v15, %v1622_v16  ;;  %v1547_v14 = vadd.f32 %v1546_v3, %v1545_v37 }
 0x18f   : > { %v2586_v41 = vmax.f32 %v1419_v19, 1.1754944e-38  ;;  %v1537_v42 = vadd.f32 %v1536_v30, %v1535_v24  ;;  %v1488_v44 = vmul.f32 4.0, %v1487_v5  ;;  %v1507_v45 = vadd.f32 %v1506_v29, %v1505_v9 }
 0x190   : > { %v1522_v39 = vadd.f32 %v1521_v20, %v1520_v23  ;;  %v1621_v22 = vmul.f32 %v1620_v13, %v1578_v38  ;;  %v1548_v31 = vrot.slane %v1547_v14, 2  ;;  %2030 = vrsqrt.f32 %v2584_v28 }
 0x191   : > { %v1538_v46 = vrot.slane %v1537_v42, 2  ;;  %2032 = vrsqrt.f32 %v2586_v41  ;;  %v2590_v8 = vmax.f32 %v1488_v44, 1.1754944e-38  ;;  %v1508_v11 = vrot.slane %v1507_v45, 1 }
 0x192   : > { %v1523_v40 = vrot.slane %v1522_v39, 1  ;;  %v1625_v53 = vsub.f32 %v1621_v22, %v1624_v7  ;;  %v1549_v43 = vadd.f32 %v1548_v31, %v1547_v14  ;;  %vm1147_vm2 = vcmp.eq.f32.partialorder %v2547_v50, inf }
 0x193   : > { %v1539_v56 = vadd.f32 %v1538_v46, %v1537_v42  ;;  %v2025_v62 = vpop.eup %2024  ;;  %v1509_v49 = vadd.f32 %v1508_v11, %v1507_v45  ;;  %2034 = vrsqrt.f32 %v2590_v8  ;;  %vm1149_vm3 = vcmp.eq.f32.partialorder %v2547_v50, 0.0 }
 0x194   : > { %v1550_v2 = vrot.slane %v1549_v43, 1  ;;  %v1524_v32 = vadd.f32 %v1523_v40, %v1522_v39  ;;  %v1626_v26 = vmul.f32 4.0, %v1625_v53  ;;  %v1146_v33 = vmul.f32 %v2025_v62, %v2547_v50 }
 0x195   : > { %v1540_v25 = vrot.slane %v1539_v56, 1  ;;  %v1150_v60 = vand.u32 2147483648, %v2547_v50  ;;  %vm1216_vm4 = vcmp.eq.f32.partialorder %v2542_v48, inf  ;;  %vm1285_vm5 = vcmp.eq.f32.partialorder %v2570_v36, inf }
 0x196   : > { %v1551_v51 = vadd.f32 %v1550_v2, %v1549_v43  ;;  %v1553_v52 = vmul.f32 %v1524_v32, %v1524_v32  ;;  %v2594_v54 = vmax.f32 %v1626_v26, 1.1754944e-38  ;;  %v1148_v63 = vsel %vm1147_vm2, %v2547_v50, %v1146_v33 }
 0x197   : > { %v1541_v18 = vadd.f32 %v1540_v25, %v1539_v56  ;;  %v1151_v5 = vsel %vm1149_vm3, %v1150_v60, %v1148_v63  ;;  %v1219_v12 = vand.u32 2147483648, %v2542_v48  ;;  %v1288_v9 = vand.u32 2147483648, %v2570_v36 }
 0x198   : > { %v2027_v27 = vpop.eup %2026  ;;  %v1552_v55 = vmul.f32 %v1551_v51, %v1509_v49  ;;  %2036 = vrsqrt.f32 %v2594_v54  ;;  %vm1218_vm6 = vcmp.eq.f32.partialorder %v2542_v48, 0.0  ;;  %vm1287_vm7 = vcmp.eq.f32.partialorder %v2570_v36, 0.0 }
 0x199   : > { %v1554_v6 = vmul.f32 %v1541_v18, %v1541_v18  ;;  %v1215_v58 = vmul.f32 %v2027_v27, %v2542_v48  ;;  %vm1354_vm8 = vcmp.eq.f32.partialorder %v2584_v28, inf  ;;  %v1357_v13 = vand.u32 2147483648, %v2584_v28 }
 0x19a   : > { %v2029_v47 = vpop.eup %2028  ;;  %vm1423_vm9 = vcmp.eq.f32.partialorder %v2586_v41, inf  ;;  %vm1356_vm10 = vcmp.eq.f32.partialorder %v2584_v28, 0.0  ;;  %v1426_v16 = vand.u32 2147483648, %v2586_v41  ;;  %vm1425_vm11 = vcmp.eq.f32.partialorder %v2586_v41, 0.0 }
 0x19b   : > { %v1555_v57 = vadd.f32 %v1554_v6, %v1553_v52  ;;  %v1284_v59 = vmul.f32 %v2029_v47, %v2570_v36  ;;  %v1217_v1 = vsel %vm1216_vm4, %v2542_v48, %v1215_v58  ;;  %vm1492_vm12 = vcmp.eq.f32.partialorder %v2590_v8, inf }
 0x19c   : > { %v1220_v19 = vsel %vm1218_vm6, %v1219_v12, %v1217_v1  ;;  %vm1494_vm13 = vcmp.eq.f32.partialorder %v2590_v8, 0.0  ;;  %vm1630_vm15 = vcmp.eq.f32.partialorder %v2594_v54, inf  ;;  %v1633_v46 = vand.u32 2147483648, %v2594_v54 }
 0x19d   : > { %v1556_v61 = vsub.f32 %v1552_v55, %v1555_v57  ;;  %v2031_v0 = vpop.eup %2030  ;;  %v1286_v34 = vsel %vm1285_vm5, %v2570_v36, %v1284_v59  ;;  %v1221_v21 = vadd.f32 %v1220_v19, %v1151_v5  ;;  %vm1632_vm1 = vcmp.eq.f32.partialorder %v2594_v54, 0.0 }
 0x19e   : > { %v2033_v4 = vpop.eup %2032  ;;  %v1353_v50 = vmul.f32 %v2031_v0, %v2584_v28  ;;  %v1289_v10 = vsel %vm1287_vm7, %v1288_v9, %v1286_v34 }
 0x19f   : > { %v1557_v17 = vmul.f32 4.0, %v1556_v61  ;;  %v1422_v37 = vmul.f32 %v2033_v4, %v2586_v41  ;;  %v1290_v15 = vadd.f32 %v1289_v10, %v1221_v21 }
 0x1a0   : > { %v1355_v23 = vsel %vm1354_vm8, %v2584_v28, %v1353_v50  ;;  %v2035_v3 = vpop.eup %2034  ;;  %v1495_v28 = vand.u32 2147483648, %v2590_v8 }
 0x1a1   : > { %v1558_v35 = vmax.f32 %v1557_v17, 1.1754944e-38  ;;  %v1424_v48 = vsel %vm1423_vm9, %v2586_v41, %v1422_v37  ;;  %v1358_v36 = vsel %vm1356_vm10, %v1357_v13, %v1355_v23  ;;  %v1491_v29 = vmul.f32 %v2035_v3, %v2590_v8 }
 0x1a2   : > { %v1359_v24 = vadd.f32 %v1358_v36, %v1290_v15  ;;  %v1427_v20 = vsel %vm1425_vm11, %v1426_v16, %v1424_v48 }
 0x1a3   : > { %2038 = vrsqrt.f32 %v1558_v35  ;;  %v1493_v7 = vsel %vm1492_vm12, %v2590_v8, %v1491_v29  ;;  %vm1561_vm14 = vcmp.eq.f32.partialorder %v1558_v35, inf  ;;  %v1564_v22 = vand.u32 2147483648, %v1558_v35 }
 0x1a4   : > { %v1428_v38 = vadd.f32 %v1427_v20, %v1359_v24  ;;  %v1496_v42 = vsel %vm1494_vm13, %v1495_v28, %v1493_v7  ;;  %vm1563_vm0 = vcmp.eq.f32.partialorder %v1558_v35, 0.0 }
 0x1a5   : > { %v2037_v30 = vpop.eup %2036 }
 0x1a6   : > { %v1629_v14 = vmul.f32 %v2037_v30, %v2594_v54  ;;  %v1497_v41 = vadd.f32 %v1496_v42, %v1428_v38 }
 0x1a8   : > { %v1631_v45 = vsel %vm1630_vm15, %v2594_v54, %v1629_v14 }
 0x1a9   : > { %v1634_v43 = vsel %vm1632_vm1, %v1633_v46, %v1631_v45 }
 0x1b0   : > { %v2039_v39 = vpop.eup %2038 }
 0x1b1   : > { %v1560_v44 = vmul.f32 %v2039_v39, %v1558_v35 }
 0x1b3   : > { %v1562_v31 = vsel %vm1561_vm14, %v1558_v35, %v1560_v44 }
 0x1b4   : > { %v1565_v40 = vsel %vm1563_vm0, %v1564_v22, %v1562_v31 }
 0x1b5   : > { %v1566_v53 = vadd.f32 %v1565_v40, %v1497_v41 }
 0x1b7   : > { %v1635_v56 = vadd.f32 %v1634_v43, %v1566_v53 }
 0x1b9   : > { %1636 = vst [vmem:[%s203_s30] sm:$0x1] %v1635_v56 }
 0x1ba   : > { %2053 = shalt.err (!%p2050_p5)
}
 0x1bb   : > { %s2054_s17 = scalar_lea.hbm %s1648_s6, 16  ;;  %s2058_s22 = scalar_lea.hbm %s2670_s2, 32 }
 0x1bc   : > { %p2055_p7 = scmp.ne.s32.totalorder %s1648_s6, %s2054_s17  ;;  %p2059_p12 = scmp.lt.s32.totalorder %s1648_s6, %s2670_s2 }
 0x1bd   : > { %p2060_p13 = scmp.lt.s32.totalorder %s2058_s22, %s2054_s17 }
 0x1be   : > { %p2056_p10 = pnand %p2055_p7, %p2156_p6 }
 0x1bf   : > { %p2061_p0 = por %p2060_p13, %p2059_p12 }
 0x1c0   : > { %p2057_p11 = pneg %p2056_p10 }
 0x1c2   : > { %p2062_p9 = pnand %p2061_p0, %p2057_p11 }
 0x1c4   : > { %2065 = shalt.err (!%p2062_p9)
}
 0x1c5   : > { %1985 = dma.vmem_to_hbm [thread:$0]  (%p2156_p6), %s1651_s3, 16, %s1648_s6, %s1638_s7  }
 0x1c6 PF: > { %s1662_s25 = sand.u32 1, %s2088_s9   ;;  %p2674_p1 = scmp.ge.s32.totalorder %s2100_s12, 2 }
 0x1c7   : > { %s1663_s26 = scalar_lea.sflag [#allocation4], %s1662_s25 }
 0x1c8   : > { %p1988_p2 = pnand %p2674_p1, %p2160_p8 }
 0x1ca   : > { %p1989_p3 = pneg %p1988_p2 }
 0x1cc   : > { %2083 = dma.done.wait (%p1989_p3), %s1663_s26, 16  }
 0x1cd   : > { %2085 = vsyncadd (%p1989_p3), %s1663_s26, 4294967280  ;;  %p12_p9 = scmp.ge.s32.totalorder %s2141_s15, 4   ;;  %s2675_s9 = smov %s2092_s10 }
 0x1ce   : > { %s2676_s10 = smov %s2096_s11  ;;  %s2677_s11 = smov %s2154_s18 }
 0x1cf   : > { %s2678_s12 = smov %s2141_s15  ;;  %14 = sbr.rel (!%p12_p9) target bundleno = 3 (0x3), region = 106 }
 0x1d4   :  { %1667 = vsyncpa [#allocation4], 1 }
 0x1d5   :  { %1669 = vsyncpa [#allocation4 + $0x1], 1 }

</bundles_post_ra>
